<compile_context>
chip_gen: v6e
topology: v6e:2x2x1
jax: 0.10.0
libtpu: 0.0.40
codegen_flags: <defaults>
</compile_context>

<pallas_src>
import functools
import math

import jax
import jax.numpy as jnp
import numpy as np
from jax.experimental import pallas as pl
from jax.experimental.pallas import tpu as pltpu


def _round_up(x, m):
    return (x + m - 1) // m * m


def _tile_bytes(shape, dtype):
    """Approximate VMEM bytes of one tile after (8,128) layout padding."""
    shape = list(shape)
    if len(shape) >= 1:
        shape[-1] = _round_up(shape[-1], 128)
    if len(shape) >= 2:
        shape[-2] = _round_up(shape[-2], 8)
    n = 1
    for s in shape:
        n *= int(s)
    return n * jnp.dtype(dtype).itemsize


def _sigmoid_via_tanh(x):
    # sigmoid(x) == 0.5 * tanh(0.5 * x) + 0.5  -> a single EUP op per call.
    return 0.5 * jnp.tanh(0.5 * x) + 0.5


def _lstm_recurrence(get_gx, len_ref, whh_ref, h_ref, c_ref, *, hidden_pad, block_t):
    """Serial TT-step LSTM recurrence on the resident (BB, Hp) h/c state.

    get_gx(i) returns the (BB, 4*Hp) f32 input projection (+bias) for step i.
    """
    Hp = hidden_pad
    TT = block_t
    tb = pl.program_id(1)          # time-block index ("arbitrary", innermost)
    t0 = tb * TT

    w_hh = whh_ref[...]            # hoisted: constant across the TT steps
    lengths = len_ref[...]         # (BB, 1) int32, hoisted

    def step(i, carry):
        h, c = carry
        # Only the recurrent matmul stays on the serial path.
        gates = (get_gx(i)
                 + jnp.dot(h.astype(w_hh.dtype), w_hh,
                           preferred_element_type=jnp.float32))      # (BB, 4*Hp) f32
        # 128-lane-aligned gate slices; nn.LSTM gate order: i, f, g, o.
        # Gate math / state update kept in f32 (v5e VPU/EUP have no bf16).
        i_g = _sigmoid_via_tanh(gates[:, 0 * Hp:1 * Hp])
        f_g = _sigmoid_via_tanh(gates[:, 1 * Hp:2 * Hp])
        g_g = jnp.tanh(gates[:, 2 * Hp:3 * Hp])
        o_g = _sigmoid_via_tanh(gates[:, 3 * Hp:4 * Hp])
        c_new = f_g * c + i_g * g_g
        h_new = o_g * jnp.tanh(c_new)
        # packed-sequence semantics: rows with t >= length keep their state.
        keep = lengths > (t0 + i)                                     # (BB, 1) bool
        return jnp.where(keep, h_new, h), jnp.where(keep, c_new, c)

    h, c = jax.lax.fori_loop(0, TT, step, (h_ref[...], c_ref[...]), unroll=True)
    h_ref[...] = h
    c_ref[...] = c


def _lstm_kernel_fused(len_ref, x_ref, wih_ref, whh_ref, b_ref,
                       h_ref, c_ref, gx_ref, *, hidden_pad, block_t):
    """Variant A: input projection done in-kernel (preferred when E >= ~128).

    len_ref : (BB, 1)  int32    sequence lengths
    x_ref   : (TT, BB, E)       embedded inputs for this time block
    wih_ref : (E, 4*Hp)         transposed, gate-padded weight_ih_l0
    whh_ref : (Hp, 4*Hp)        transposed, gate-padded weight_hh_l0
    b_ref   : (1, 4*Hp) f32     pre-summed bias (b_ih + b_hh), gate-padded
    h_ref   : (BB, Hp)  f32     output; doubles as the resident h state
    c_ref   : (BB, Hp)  f32     VMEM scratch; resident c state
    gx_ref  : (TT*BB, 4*Hp) f32 VMEM scratch; per-block input projection
    """
    TT = block_t
    BB = h_ref.shape[0]
    E = x_ref.shape[-1]
    tb = pl.program_id(1)

    @pl.when(tb == 0)
    def _init():
        h_ref[...] = jnp.zeros_like(h_ref)
        c_ref[...] = jnp.zeros_like(c_ref)

    # One big MXU matmul per time block; result into explicit VMEM scratch so
    # the live set across the serial step loop stays bounded.
    x_blk = x_ref[...].reshape(TT * BB, E)
    gx_ref[...] = (jnp.dot(x_blk, wih_ref[...],
                           preferred_element_type=jnp.float32) + b_ref[...])

    def get_gx(i):
        return gx_ref[pl.ds(pl.multiple_of(i * BB, BB), BB), :]

    _lstm_recurrence(get_gx, len_ref, whh_ref, h_ref, c_ref,
                     hidden_pad=hidden_pad, block_t=block_t)


def _lstm_kernel_pregx(len_ref, gx_ref, whh_ref, h_ref, c_ref, *,
                       hidden_pad, block_t):
    """Variant B: gx = x @ W_ih^T + b precomputed in XLA, streamed per block.

    gx_ref : (TT, BB, 4*Hp) f32   pre-activation input contributions
    """
    tb = pl.program_id(1)

    @pl.when(tb == 0)
    def _init():
        h_ref[...] = jnp.zeros_like(h_ref)
        c_ref[...] = jnp.zeros_like(c_ref)

    def get_gx(i):
        return gx_ref[i]          # (BB, 4*Hp) f32, dynamic leading-axis read

    _lstm_recurrence(get_gx, len_ref, whh_ref, h_ref, c_ref,
                     hidden_pad=hidden_pad, block_t=block_t)


def rnn_lstm_forward(text, text_lengths, params, *, block_t=8, block_b=None,
                     compute_dtype=jnp.float32, precompute_gx=None):
    """Equivalent of RNN.forward((text, text_lengths)) (LSTM, 1 layer, unidir, eval)."""
    emb_table = params["embedding"]                     # (vocab, E)
    w_ih = params["weight_ih_l0"]                       # (4H, E)
    w_hh = params["weight_hh_l0"]                       # (4H, H)
    bias = params["bias_ih_l0"] + params["bias_hh_l0"]  # pre-summed (4H,)
    w_dec = params["decoder_w"]                         # (out_dim, H)
    b_dec = params["decoder_b"]                         # (out_dim,)

    T, B = text.shape
    E = emb_table.shape[1]
    H = w_hh.shape[1]
    out_dim = w_dec.shape[0]

    # ---- padded / lane-aligned geometry -------------------------------------
    is_bf16 = jnp.dtype(compute_dtype) == jnp.dtype(jnp.bfloat16)
    sub = 16 if is_bf16 else 8            # bf16 packs two rows per sublane pair
    Hp = _round_up(max(H, 128), 128)      # each gate padded to a 128-lane multiple
    G = 4 * Hp
    Bp = _round_up(max(B, sub), sub)
    TT = block_t
    Tp = _round_up(T, TT)

    if block_b is None:
        half = Bp // 2
        # Split the batch for megacore only when each half still fills MXU rows.
        BB = half if (half >= 128 and half % sub == 0) else Bp
    else:
        BB = block_b
        assert BB % sub == 0 and Bp % BB == 0, \
            "block_b must be a multiple of the sublane packing and divide padded B"

    if precompute_gx is None:
        precompute_gx = E < 128           # lane-sparse E: do the projection in XLA

    # ---- glue (XLA): embedding lookup + zero padding ------------------------
    x = jnp.take(emb_table, text, axis=0).astype(compute_dtype)       # (T, B, E)
    x = jnp.pad(x, ((0, Tp - T), (0, Bp - B), (0, 0)))                 # (Tp, Bp, E)
    lengths = jnp.pad(text_lengths.astype(jnp.int32), (0, Bp - B)).reshape(Bp, 1)

    # ---- weight repacking: transpose + per-gate padding to Hp lanes ---------
    def pad_gates_T(w, in_dim, in_pad):
        # w: (4H, in_dim) -> (in_pad, 4*Hp), gate k in columns [k*Hp, k*Hp+H)
        w4 = w.reshape(4, H, in_dim)
        wp = jnp.zeros((4, Hp, in_pad), w.dtype).at[:, :H, :in_dim].set(w4)
        return wp.transpose(2, 0, 1).reshape(in_pad, G)

    w_ih_p = pad_gates_T(w_ih, E, E).astype(compute_dtype)             # (E, G)
    w_hh_p = pad_gates_T(w_hh, H, Hp).astype(compute_dtype)            # (Hp, G)
    b_p = (jnp.zeros((4, Hp), jnp.float32)
           .at[:, :H].set(bias.reshape(4, H).astype(jnp.float32))
           .reshape(1, G))                                             # (1, G) f32

    const_wt = dict(pipeline_mode=pl.Buffered(1))   # block index never changes

    if precompute_gx:
        # Full input projection in XLA (MXU-friendly big GEMM), f32 result.
        gx = (jnp.einsum("tbe,eg->tbg", x, w_ih_p,
                         preferred_element_type=jnp.float32)
              + b_p.reshape(1, 1, G))                                  # (Tp, Bp, G)
        kernel = functools.partial(_lstm_kernel_pregx, hidden_pad=Hp, block_t=TT)
        in_specs = [
            pl.BlockSpec((BB, 1), lambda bb, tb: (bb, 0)),             # lengths
            pl.BlockSpec((TT, BB, G), lambda bb, tb: (tb, bb, 0)),     # gx stream
            pl.BlockSpec((Hp, G), lambda bb, tb: (0, 0), **const_wt),  # W_hh^T
        ]
        scratch_shapes = [pltpu.VMEM((BB, Hp), jnp.float32)]           # c state
        operands = (lengths, gx, w_hh_p)
        est = (2 * _tile_bytes((TT, BB, G), jnp.float32)
               + _tile_bytes((Hp, G), compute_dtype)
               + 2 * _tile_bytes((BB, 1), jnp.int32)
               + 2 * _tile_bytes((BB, Hp), jnp.float32)
               + _tile_bytes((BB, Hp), jnp.float32))
    else:
        kernel = functools.partial(_lstm_kernel_fused, hidden_pad=Hp, block_t=TT)
        in_specs = [
            pl.BlockSpec((BB, 1), lambda bb, tb: (bb, 0)),             # lengths
            pl.BlockSpec((TT, BB, E), lambda bb, tb: (tb, bb, 0)),     # embedded x
            pl.BlockSpec((E, G), lambda bb, tb: (0, 0), **const_wt),   # W_ih^T
            pl.BlockSpec((Hp, G), lambda bb, tb: (0, 0), **const_wt),  # W_hh^T
            pl.BlockSpec((1, G), lambda bb, tb: (0, 0), **const_wt),   # bias
        ]
        scratch_shapes = [pltpu.VMEM((BB, Hp), jnp.float32),           # c state
                          pltpu.VMEM((TT * BB, G), jnp.float32)]       # gx scratch
        operands = (lengths, x, w_ih_p, w_hh_p, b_p)
        est = (2 * _tile_bytes((TT, BB, E), compute_dtype)
               + _tile_bytes((E, G), compute_dtype)
               + _tile_bytes((Hp, G), compute_dtype)
               + _tile_bytes((1, G), jnp.float32)
               + 2 * _tile_bytes((BB, 1), jnp.int32)
               + 2 * _tile_bytes((BB, Hp), jnp.float32)
               + _tile_bytes((BB, Hp), jnp.float32)
               + _tile_bytes((TT * BB, G), jnp.float32))

    # Explicit scoped-VMEM budget with headroom (v7x has only 64 MiB physical).
    vmem_limit = int(min(100 << 20, max(32 << 20, 2 * est + (4 << 20))))

    h_pad = pl.pallas_call(
        kernel,
        out_shape=jax.ShapeDtypeStruct((Bp, Hp), jnp.float32),
        grid_spec=pltpu.PrefetchScalarGridSpec(
            num_scalar_prefetch=0,
            grid=(Bp // BB, Tp // TT),                  # (batch blocks, time blocks)
            in_specs=in_specs,
            out_specs=pl.BlockSpec((BB, Hp), lambda bb, tb: (bb, 0)),  # final h
            scratch_shapes=scratch_shapes,
        ),
        compiler_params=pltpu.CompilerParams(
            # batch blocks are independent (megacore-parallel on v7x);
            # time must stay the innermost sequential ("arbitrary") axis.
            dimension_semantics=("parallel", "arbitrary"),
            vmem_limit_bytes=vmem_limit),
    )(*operands)

    # ---- glue (XLA): dropout(eval)=identity, decoder Linear, squeeze(1) -----
    h = h_pad[:B, :H]
    decoded = h @ w_dec.T.astype(h.dtype) + b_dec.astype(h.dtype)
    return decoded[:, 0] if out_dim == 1 else decoded


def _reference_forward(text, text_lengths, params):
    """Pure-JAX f32 reference (lax.scan LSTM) for validation."""
    emb_table = params["embedding"]
    w_ih, w_hh = params["weight_ih_l0"], params["weight_hh_l0"]
    b_ih, b_hh = params["bias_ih_l0"], params["bias_hh_l0"]
    w_dec, b_dec = params["decoder_w"], params["decoder_b"]
    T, B = text.shape
    H = w_hh.shape[1]
    x = jnp.take(emb_table, text, axis=0).astype(jnp.float32)

    def step(carry, inp):
        h, c = carry
        x_t, t = inp
        gates = x_t @ w_ih.T + b_ih + h @ w_hh.T + b_hh
        i = jax.nn.sigmoid(gates[:, 0 * H:1 * H])
        f = jax.nn.sigmoid(gates[:, 1 * H:2 * H])
        g = jnp.tanh(gates[:, 2 * H:3 * H])
        o = jax.nn.sigmoid(gates[:, 3 * H:4 * H])
        c_new = f * c + i * g
        h_new = o * jnp.tanh(c_new)
        mask = (text_lengths > t)[:, None]
        h = jnp.where(mask, h_new, h)
        c = jnp.where(mask, c_new, c)
        return (h, c), None

    h0 = jnp.zeros((B, H), jnp.float32)
    (h, _), _ = jax.lax.scan(step, (h0, h0), (x, jnp.arange(T)))
    out = h @ w_dec.T + b_dec
    return out.squeeze(1)


def _init_params(key, vocab_size, embedding_dim, hidden_dim, output_dim, pad_idx):
    ks = jax.random.split(key, 8)
    k_lstm = 1.0 / math.sqrt(hidden_dim)
    emb = jax.random.normal(ks[0], (vocab_size, embedding_dim), jnp.float32)
    emb = emb.at[pad_idx].set(0.0)  # padding_idx row is zero
    uni = lambda k, shape: jax.random.uniform(k, shape, jnp.float32, -k_lstm, k_lstm)
    return {
        "embedding": emb,
        "weight_ih_l0": uni(ks[1], (4 * hidden_dim, embedding_dim)),
        "weight_hh_l0": uni(ks[2], (4 * hidden_dim, hidden_dim)),
        "bias_ih_l0": uni(ks[3], (4 * hidden_dim,)),
        "bias_hh_l0": uni(ks[4], (4 * hidden_dim,)),
        # nn.Linear(hidden_dim * n_directions, output_dim), n_directions = 1
        "decoder_w": uni(ks[5], (output_dim, hidden_dim)),
        "decoder_b": uni(ks[6], (output_dim,)),
    }


if __name__ == "__main__":
    # rnn_type='LSTM', n_layers=1, bidirectional=False, dropout=0 (eval), pad_idx=0
    vocab_size, embedding_dim, hidden_dim, output_dim, pad_idx = 50, 32, 32, 1, 0

    key = jax.random.PRNGKey(0)
    k_params, k_text1, k_text2 = jax.random.split(key, 3)
    params = _init_params(k_params, vocab_size, embedding_dim, hidden_dim,
                          output_dim, pad_idx)

    # ---- case 1: T=8, B=8, pack_padded_sequence needs sorted-descending lengths
    T, B = 8, 8
    text_lengths = jnp.array([8, 8, 7, 6, 5, 4, 3, 2], dtype=jnp.int32)
    text = jax.random.randint(k_text1, (T, B), 1, vocab_size, dtype=jnp.int32)
    text = jnp.where(jnp.arange(T)[:, None] < text_lengths[None, :], text, pad_idx)
    ref = jax.block_until_ready(_reference_forward(text, text_lengths, params))

    # (a) in-kernel input projection, f32, block_t=4 -> exercises cross-block carry
    out_a = jax.block_until_ready(rnn_lstm_forward(
        text, text_lengths, params, block_t=4, precompute_gx=False))
    np.testing.assert_allclose(np.asarray(out_a), np.asarray(ref),
                               rtol=2e-3, atol=2e-3)

    # (b) streamed precomputed-gx path (E < 128), f32
    out_b = jax.block_until_ready(rnn_lstm_forward(
        text, text_lengths, params, block_t=8, precompute_gx=True))
    np.testing.assert_allclose(np.asarray(out_b), np.asarray(ref),
                               rtol=2e-3, atol=2e-3)

    # (c) bf16 MXU operands (f32 accumulation, f32 gate/state math)
    out_c = jax.block_until_ready(rnn_lstm_forward(
        text, text_lengths, params, block_t=4, compute_dtype=jnp.bfloat16))
    np.testing.assert_allclose(np.asarray(out_c), np.asarray(ref),
                               rtol=1e-1, atol=1e-1)

    # ---- case 2: B=16 with an explicit 2-block batch grid ("parallel" axis) ---
    T2, B2 = 12, 16
    lengths2 = jnp.sort(jax.random.randint(k_text2, (B2,), 2, T2 + 1,
                                           dtype=jnp.int32))[::-1]
    text2 = jax.random.randint(k_text2, (T2, B2), 1, vocab_size, dtype=jnp.int32)
    text2 = jnp.where(jnp.arange(T2)[:, None] < lengths2[None, :], text2, pad_idx)
    ref2 = jax.block_until_ready(_reference_forward(text2, lengths2, params))

    out_d = jax.block_until_ready(rnn_lstm_forward(
        text2, lengths2, params, block_t=4, block_b=8, precompute_gx=False))
    np.testing.assert_allclose(np.asarray(out_d), np.asarray(ref2),
                               rtol=2e-3, atol=2e-3)

    print("KERNEL_OK")
</pallas_src>

<mosaic_0001>
module attributes {stable_mosaic.version = 11 : i64} {
  func.func @_lstm_kernel_fused(%arg0: i32, %arg1: i32, %arg2: memref<8x1xi32, #tpu.memory_space<vmem>>, %arg3: memref<4x8x32xf32, #tpu.memory_space<vmem>>, %arg4: memref<32x512xf32, #tpu.memory_space<vmem>>, %arg5: memref<128x512xf32, #tpu.memory_space<vmem>>, %arg6: memref<1x512xf32, #tpu.memory_space<vmem>>, %arg7: memref<8x128xf32, #tpu.memory_space<vmem>>, %arg8: memref<8x128xf32, #tpu.memory_space<vmem>>, %arg9: memref<32x512xf32, #tpu.memory_space<vmem>>) attributes {dimension_semantics = [#tpu.dimension_semantics<parallel>, #tpu.dimension_semantics<arbitrary>], iteration_bounds = array<i64: 1, 2>, scalar_prefetch = 0 : i64, scratch_operands = 2 : i64, tpu.core_type = #tpu.core_type<tc>, window_params = [{transform_indices = @transform_0, window_bounds = array<i64: 8, 1>}, {transform_indices = @transform_1, window_bounds = array<i64: 4, 8, 32>}, {pipeline_mode = #tpu.pipeline_mode<synchronous>, transform_indices = @transform_2, window_bounds = array<i64: 32, 512>}, {pipeline_mode = #tpu.pipeline_mode<synchronous>, transform_indices = @transform_3, window_bounds = array<i64: 128, 512>}, {pipeline_mode = #tpu.pipeline_mode<synchronous>, transform_indices = @transform_4, window_bounds = array<i64: 1, 512>}, {transform_indices = @transform_5, window_bounds = array<i64: 8, 128>}]} {
    %c0_i32 = arith.constant 0 : i32
    %0 = arith.cmpi eq, %arg1, %c0_i32 : i32
    %1 = arith.extui %0 : i1 to i32
    %c0_i32_0 = arith.constant 0 : i32
    %2 = arith.cmpi ne, %1, %c0_i32_0 : i32
    scf.if %2 {
      %cst_70 = arith.constant 0.000000e+00 : f32
      %202 = vector.broadcast %cst_70 : f32 to vector<8x128xf32>
      %c0_71 = arith.constant 0 : index
      %c0_72 = arith.constant 0 : index
      %203 = vector.load %arg7[%c0_71, %c0_72] : memref<8x128xf32, #tpu.memory_space<vmem>>, vector<8x128xf32>
      tpu.vector_store %arg7[%c0_71, %c0_72], %202 {strides = array<i32>} : memref<8x128xf32, #tpu.memory_space<vmem>>, vector<8x128xf32>,
      %cst_73 = arith.constant 0.000000e+00 : f32
      %204 = vector.broadcast %cst_73 : f32 to vector<8x128xf32>
      %c0_74 = arith.constant 0 : index
      %c0_75 = arith.constant 0 : index
      %205 = vector.load %arg8[%c0_74, %c0_75] : memref<8x128xf32, #tpu.memory_space<vmem>>, vector<8x128xf32>
      tpu.vector_store %arg8[%c0_74, %c0_75], %204 {strides = array<i32>} : memref<8x128xf32, #tpu.memory_space<vmem>>, vector<8x128xf32>,
    } else {
    }
    %c0 = arith.constant 0 : index
    %c0_1 = arith.constant 0 : index
    %c0_2 = arith.constant 0 : index
    %3 = vector.load %arg3[%c0, %c0_1, %c0_2] : memref<4x8x32xf32, #tpu.memory_space<vmem>>, vector<4x8x32xf32>
    %4 = vector.shape_cast %3 : vector<4x8x32xf32> to vector<32x32xf32>
    %c0_3 = arith.constant 0 : index
    %c0_4 = arith.constant 0 : index
    %5 = vector.load %arg4[%c0_3, %c0_4] : memref<32x512xf32, #tpu.memory_space<vmem>>, vector<32x512xf32>
    %cst = arith.constant dense<0.000000e+00> : vector<32x512xf32>
    %6 = tpu.matmul %4, %5, %cst {dimension_numbers = #tpu.dot_dimension_numbers<[1], [0], [0], [1], [0, 0, 1, 1], [], []>} : vector<32x32xf32>, vector<32x512xf32>, vector<32x512xf32> -> vector<32x512xf32>
    %c0_5 = arith.constant 0 : index
    %c0_6 = arith.constant 0 : index
    %7 = vector.load %arg6[%c0_5, %c0_6] : memref<1x512xf32, #tpu.memory_space<vmem>>, vector<1x512xf32>
    %8 = vector.broadcast %7 : vector<1x512xf32> to vector<32x512xf32>
    %9 = arith.addf %6, %8 : vector<32x512xf32>
    %c0_7 = arith.constant 0 : index
    %c0_8 = arith.constant 0 : index
    %10 = vector.load %arg9[%c0_7, %c0_8] : memref<32x512xf32, #tpu.memory_space<vmem>>, vector<32x512xf32>
    tpu.vector_store %arg9[%c0_7, %c0_8], %9 {strides = array<i32>} : memref<32x512xf32, #tpu.memory_space<vmem>>, vector<32x512xf32>,
    %c4_i32 = arith.constant 4 : i32
    %11 = arith.muli %arg1, %c4_i32 : i32
    %c0_9 = arith.constant 0 : index
    %c0_10 = arith.constant 0 : index
    %12 = vector.load %arg5[%c0_9, %c0_10] : memref<128x512xf32, #tpu.memory_space<vmem>>, vector<128x512xf32>
    %c0_11 = arith.constant 0 : index
    %c0_12 = arith.constant 0 : index
    %13 = vector.load %arg2[%c0_11, %c0_12] : memref<8x1xi32, #tpu.memory_space<vmem>>, vector<8x1xi32>
    %c0_13 = arith.constant 0 : index
    %c0_14 = arith.constant 0 : index
    %14 = vector.load %arg7[%c0_13, %c0_14] : memref<8x128xf32, #tpu.memory_space<vmem>>, vector<8x128xf32>
    %c0_15 = arith.constant 0 : index
    %c0_16 = arith.constant 0 : index
    %15 = vector.load %arg8[%c0_15, %c0_16] : memref<8x128xf32, #tpu.memory_space<vmem>>, vector<8x128xf32>
    %c0_i32_17 = arith.constant 0 : i32
    %c8_i32 = arith.constant 8 : i32
    %16 = arith.muli %c0_i32_17, %c8_i32 : i32
    %17 = tpu.assume_multiple %16, 8 : i32
    %18 = arith.index_cast %17 : i32 to index
    %c0_18 = arith.constant 0 : index
    %19 = vector.load %arg9[%18, %c0_18] : memref<32x512xf32, #tpu.memory_space<vmem>>, vector<8x512xf32>
    %cst_19 = arith.constant dense<0.000000e+00> : vector<8x512xf32>
    %20 = tpu.matmul %14, %12, %cst_19 {dimension_numbers = #tpu.dot_dimension_numbers<[1], [0], [0], [1], [0, 0, 1, 1], [], []>} : vector<8x128xf32>, vector<128x512xf32>, vector<8x512xf32> -> vector<8x512xf32>
    %21 = arith.addf %19, %20 : vector<8x512xf32>
    %22 = vector.extract_strided_slice %21 {offsets = [0, 0], sizes = [8, 128], strides = [1, 1]} : vector<8x512xf32> to vector<8x128xf32>
    %cst_20 = arith.constant 5.000000e-01 : f32
    %23 = vector.broadcast %cst_20 : f32 to vector<8x128xf32>
    %24 = arith.mulf %23, %22 : vector<8x128xf32>
    %25 = math.tanh %24 : vector<8x128xf32>
    %cst_21 = arith.constant 5.000000e-01 : f32
    %26 = vector.broadcast %cst_21 : f32 to vector<8x128xf32>
    %27 = arith.mulf %26, %25 : vector<8x128xf32>
    %cst_22 = arith.constant 5.000000e-01 : f32
    %28 = vector.broadcast %cst_22 : f32 to vector<8x128xf32>
    %29 = arith.addf %27, %28 : vector<8x128xf32>
    %30 = vector.extract_strided_slice %21 {offsets = [0, 128], sizes = [8, 128], strides = [1, 1]} : vector<8x512xf32> to vector<8x128xf32>
    %cst_23 = arith.constant 5.000000e-01 : f32
    %31 = vector.broadcast %cst_23 : f32 to vector<8x128xf32>
    %32 = arith.mulf %31, %30 : vector<8x128xf32>
    %33 = math.tanh %32 : vector<8x128xf32>
    %cst_24 = arith.constant 5.000000e-01 : f32
    %34 = vector.broadcast %cst_24 : f32 to vector<8x128xf32>
    %35 = arith.mulf %34, %33 : vector<8x128xf32>
    %cst_25 = arith.constant 5.000000e-01 : f32
    %36 = vector.broadcast %cst_25 : f32 to vector<8x128xf32>
    %37 = arith.addf %35, %36 : vector<8x128xf32>
    %38 = vector.extract_strided_slice %21 {offsets = [0, 256], sizes = [8, 128], strides = [1, 1]} : vector<8x512xf32> to vector<8x128xf32>
    %39 = math.tanh %38 : vector<8x128xf32>
    %40 = vector.extract_strided_slice %21 {offsets = [0, 384], sizes = [8, 128], strides = [1, 1]} : vector<8x512xf32> to vector<8x128xf32>
    %cst_26 = arith.constant 5.000000e-01 : f32
    %41 = vector.broadcast %cst_26 : f32 to vector<8x128xf32>
    %42 = arith.mulf %41, %40 : vector<8x128xf32>
    %43 = math.tanh %42 : vector<8x128xf32>
    %cst_27 = arith.constant 5.000000e-01 : f32
    %44 = vector.broadcast %cst_27 : f32 to vector<8x128xf32>
    %45 = arith.mulf %44, %43 : vector<8x128xf32>
    %cst_28 = arith.constant 5.000000e-01 : f32
    %46 = vector.broadcast %cst_28 : f32 to vector<8x128xf32>
    %47 = arith.addf %45, %46 : vector<8x128xf32>
    %48 = arith.mulf %37, %15 : vector<8x128xf32>
    %49 = arith.mulf %29, %39 : vector<8x128xf32>
    %50 = arith.addf %48, %49 : vector<8x128xf32>
    %51 = math.tanh %50 : vector<8x128xf32>
    %52 = arith.mulf %47, %51 : vector<8x128xf32>
    %53 = arith.addi %11, %c0_i32_17 : i32
    %54 = vector.broadcast %53 : i32 to vector<8x1xi32>
    %55 = arith.cmpi sgt, %13, %54 : vector<8x1xi32>
    %56 = vector.shape_cast %55 : vector<8x1xi1> to vector<8x1xi1>
    %57 = vector.broadcast %56 : vector<8x1xi1> to vector<8x128xi1>
    %58 = arith.select %57, %52, %14 : vector<8x128xi1>, vector<8x128xf32>
    %59 = vector.shape_cast %55 : vector<8x1xi1> to vector<8x1xi1>
    %60 = vector.broadcast %59 : vector<8x1xi1> to vector<8x128xi1>
    %61 = arith.select %60, %50, %15 : vector<8x128xi1>, vector<8x128xf32>
    %c1_i32 = arith.constant 1 : i32
    %c8_i32_29 = arith.constant 8 : i32
    %62 = arith.muli %c1_i32, %c8_i32_29 : i32
    %63 = tpu.assume_multiple %62, 8 : i32
    %64 = arith.index_cast %63 : i32 to index
    %c0_30 = arith.constant 0 : index
    %65 = vector.load %arg9[%64, %c0_30] : memref<32x512xf32, #tpu.memory_space<vmem>>, vector<8x512xf32>
    %cst_31 = arith.constant dense<0.000000e+00> : vector<8x512xf32>
    %66 = tpu.matmul %58, %12, %cst_31 {dimension_numbers = #tpu.dot_dimension_numbers<[1], [0], [0], [1], [0, 0, 1, 1], [], []>} : vector<8x128xf32>, vector<128x512xf32>, vector<8x512xf32> -> vector<8x512xf32>
    %67 = arith.addf %65, %66 : vector<8x512xf32>
    %68 = vector.extract_strided_slice %67 {offsets = [0, 0], sizes = [8, 128], strides = [1, 1]} : vector<8x512xf32> to vector<8x128xf32>
    %cst_32 = arith.constant 5.000000e-01 : f32
    %69 = vector.broadcast %cst_32 : f32 to vector<8x128xf32>
    %70 = arith.mulf %69, %68 : vector<8x128xf32>
    %71 = math.tanh %70 : vector<8x128xf32>
    %cst_33 = arith.constant 5.000000e-01 : f32
    %72 = vector.broadcast %cst_33 : f32 to vector<8x128xf32>
    %73 = arith.mulf %72, %71 : vector<8x128xf32>
    %cst_34 = arith.constant 5.000000e-01 : f32
    %74 = vector.broadcast %cst_34 : f32 to vector<8x128xf32>
    %75 = arith.addf %73, %74 : vector<8x128xf32>
    %76 = vector.extract_strided_slice %67 {offsets = [0, 128], sizes = [8, 128], strides = [1, 1]} : vector<8x512xf32> to vector<8x128xf32>
    %cst_35 = arith.constant 5.000000e-01 : f32
    %77 = vector.broadcast %cst_35 : f32 to vector<8x128xf32>
    %78 = arith.mulf %77, %76 : vector<8x128xf32>
    %79 = math.tanh %78 : vector<8x128xf32>
    %cst_36 = arith.constant 5.000000e-01 : f32
    %80 = vector.broadcast %cst_36 : f32 to vector<8x128xf32>
    %81 = arith.mulf %80, %79 : vector<8x128xf32>
    %cst_37 = arith.constant 5.000000e-01 : f32
    %82 = vector.broadcast %cst_37 : f32 to vector<8x128xf32>
    %83 = arith.addf %81, %82 : vector<8x128xf32>
    %84 = vector.extract_strided_slice %67 {offsets = [0, 256], sizes = [8, 128], strides = [1, 1]} : vector<8x512xf32> to vector<8x128xf32>
    %85 = math.tanh %84 : vector<8x128xf32>
    %86 = vector.extract_strided_slice %67 {offsets = [0, 384], sizes = [8, 128], strides = [1, 1]} : vector<8x512xf32> to vector<8x128xf32>
    %cst_38 = arith.constant 5.000000e-01 : f32
    %87 = vector.broadcast %cst_38 : f32 to vector<8x128xf32>
    %88 = arith.mulf %87, %86 : vector<8x128xf32>
    %89 = math.tanh %88 : vector<8x128xf32>
    %cst_39 = arith.constant 5.000000e-01 : f32
    %90 = vector.broadcast %cst_39 : f32 to vector<8x128xf32>
    %91 = arith.mulf %90, %89 : vector<8x128xf32>
    %cst_40 = arith.constant 5.000000e-01 : f32
    %92 = vector.broadcast %cst_40 : f32 to vector<8x128xf32>
    %93 = arith.addf %91, %92 : vector<8x128xf32>
    %94 = arith.mulf %83, %61 : vector<8x128xf32>
    %95 = arith.mulf %75, %85 : vector<8x128xf32>
    %96 = arith.addf %94, %95 : vector<8x128xf32>
    %97 = math.tanh %96 : vector<8x128xf32>
    %98 = arith.mulf %93, %97 : vector<8x128xf32>
    %99 = arith.addi %11, %c1_i32 : i32
    %100 = vector.broadcast %99 : i32 to vector<8x1xi32>
    %101 = arith.cmpi sgt, %13, %100 : vector<8x1xi32>
    %102 = vector.shape_cast %101 : vector<8x1xi1> to vector<8x1xi1>
    %103 = vector.broadcast %102 : vector<8x1xi1> to vector<8x128xi1>
    %104 = arith.select %103, %98, %58 : vector<8x128xi1>, vector<8x128xf32>
    %105 = vector.shape_cast %101 : vector<8x1xi1> to vector<8x1xi1>
    %106 = vector.broadcast %105 : vector<8x1xi1> to vector<8x128xi1>
    %107 = arith.select %106, %96, %61 : vector<8x128xi1>, vector<8x128xf32>
    %c2_i32 = arith.constant 2 : i32
    %c8_i32_41 = arith.constant 8 : i32
    %108 = arith.muli %c2_i32, %c8_i32_41 : i32
    %109 = tpu.assume_multiple %108, 8 : i32
    %110 = arith.index_cast %109 : i32 to index
    %c0_42 = arith.constant 0 : index
    %111 = vector.load %arg9[%110, %c0_42] : memref<32x512xf32, #tpu.memory_space<vmem>>, vector<8x512xf32>
    %cst_43 = arith.constant dense<0.000000e+00> : vector<8x512xf32>
    %112 = tpu.matmul %104, %12, %cst_43 {dimension_numbers = #tpu.dot_dimension_numbers<[1], [0], [0], [1], [0, 0, 1, 1], [], []>} : vector<8x128xf32>, vector<128x512xf32>, vector<8x512xf32> -> vector<8x512xf32>
    %113 = arith.addf %111, %112 : vector<8x512xf32>
    %114 = vector.extract_strided_slice %113 {offsets = [0, 0], sizes = [8, 128], strides = [1, 1]} : vector<8x512xf32> to vector<8x128xf32>
    %cst_44 = arith.constant 5.000000e-01 : f32
    %115 = vector.broadcast %cst_44 : f32 to vector<8x128xf32>
    %116 = arith.mulf %115, %114 : vector<8x128xf32>
    %117 = math.tanh %116 : vector<8x128xf32>
    %cst_45 = arith.constant 5.000000e-01 : f32
    %118 = vector.broadcast %cst_45 : f32 to vector<8x128xf32>
    %119 = arith.mulf %118, %117 : vector<8x128xf32>
    %cst_46 = arith.constant 5.000000e-01 : f32
    %120 = vector.broadcast %cst_46 : f32 to vector<8x128xf32>
    %121 = arith.addf %119, %120 : vector<8x128xf32>
    %122 = vector.extract_strided_slice %113 {offsets = [0, 128], sizes = [8, 128], strides = [1, 1]} : vector<8x512xf32> to vector<8x128xf32>
    %cst_47 = arith.constant 5.000000e-01 : f32
    %123 = vector.broadcast %cst_47 : f32 to vector<8x128xf32>
    %124 = arith.mulf %123, %122 : vector<8x128xf32>
    %125 = math.tanh %124 : vector<8x128xf32>
    %cst_48 = arith.constant 5.000000e-01 : f32
    %126 = vector.broadcast %cst_48 : f32 to vector<8x128xf32>
    %127 = arith.mulf %126, %125 : vector<8x128xf32>
    %cst_49 = arith.constant 5.000000e-01 : f32
    %128 = vector.broadcast %cst_49 : f32 to vector<8x128xf32>
    %129 = arith.addf %127, %128 : vector<8x128xf32>
    %130 = vector.extract_strided_slice %113 {offsets = [0, 256], sizes = [8, 128], strides = [1, 1]} : vector<8x512xf32> to vector<8x128xf32>
    %131 = math.tanh %130 : vector<8x128xf32>
    %132 = vector.extract_strided_slice %113 {offsets = [0, 384], sizes = [8, 128], strides = [1, 1]} : vector<8x512xf32> to vector<8x128xf32>
    %cst_50 = arith.constant 5.000000e-01 : f32
    %133 = vector.broadcast %cst_50 : f32 to vector<8x128xf32>
    %134 = arith.mulf %133, %132 : vector<8x128xf32>
    %135 = math.tanh %134 : vector<8x128xf32>
    %cst_51 = arith.constant 5.000000e-01 : f32
    %136 = vector.broadcast %cst_51 : f32 to vector<8x128xf32>
    %137 = arith.mulf %136, %135 : vector<8x128xf32>
    %cst_52 = arith.constant 5.000000e-01 : f32
    %138 = vector.broadcast %cst_52 : f32 to vector<8x128xf32>
    %139 = arith.addf %137, %138 : vector<8x128xf32>
    %140 = arith.mulf %129, %107 : vector<8x128xf32>
    %141 = arith.mulf %121, %131 : vector<8x128xf32>
    %142 = arith.addf %140, %141 : vector<8x128xf32>
    %143 = math.tanh %142 : vector<8x128xf32>
    %144 = arith.mulf %139, %143 : vector<8x128xf32>
    %145 = arith.addi %11, %c2_i32 : i32
    %146 = vector.broadcast %145 : i32 to vector<8x1xi32>
    %147 = arith.cmpi sgt, %13, %146 : vector<8x1xi32>
    %148 = vector.shape_cast %147 : vector<8x1xi1> to vector<8x1xi1>
    %149 = vector.broadcast %148 : vector<8x1xi1> to vector<8x128xi1>
    %150 = arith.select %149, %144, %104 : vector<8x128xi1>, vector<8x128xf32>
    %151 = vector.shape_cast %147 : vector<8x1xi1> to vector<8x1xi1>
    %152 = vector.broadcast %151 : vector<8x1xi1> to vector<8x128xi1>
    %153 = arith.select %152, %142, %107 : vector<8x128xi1>, vector<8x128xf32>
    %c3_i32 = arith.constant 3 : i32
    %c8_i32_53 = arith.constant 8 : i32
    %154 = arith.muli %c3_i32, %c8_i32_53 : i32
    %155 = tpu.assume_multiple %154, 8 : i32
    %156 = arith.index_cast %155 : i32 to index
    %c0_54 = arith.constant 0 : index
    %157 = vector.load %arg9[%156, %c0_54] : memref<32x512xf32, #tpu.memory_space<vmem>>, vector<8x512xf32>
    %cst_55 = arith.constant dense<0.000000e+00> : vector<8x512xf32>
    %158 = tpu.matmul %150, %12, %cst_55 {dimension_numbers = #tpu.dot_dimension_numbers<[1], [0], [0], [1], [0, 0, 1, 1], [], []>} : vector<8x128xf32>, vector<128x512xf32>, vector<8x512xf32> -> vector<8x512xf32>
    %159 = arith.addf %157, %158 : vector<8x512xf32>
    %160 = vector.extract_strided_slice %159 {offsets = [0, 0], sizes = [8, 128], strides = [1, 1]} : vector<8x512xf32> to vector<8x128xf32>
    %cst_56 = arith.constant 5.000000e-01 : f32
    %161 = vector.broadcast %cst_56 : f32 to vector<8x128xf32>
    %162 = arith.mulf %161, %160 : vector<8x128xf32>
    %163 = math.tanh %162 : vector<8x128xf32>
    %cst_57 = arith.constant 5.000000e-01 : f32
    %164 = vector.broadcast %cst_57 : f32 to vector<8x128xf32>
    %165 = arith.mulf %164, %163 : vector<8x128xf32>
    %cst_58 = arith.constant 5.000000e-01 : f32
    %166 = vector.broadcast %cst_58 : f32 to vector<8x128xf32>
    %167 = arith.addf %165, %166 : vector<8x128xf32>
    %168 = vector.extract_strided_slice %159 {offsets = [0, 128], sizes = [8, 128], strides = [1, 1]} : vector<8x512xf32> to vector<8x128xf32>
    %cst_59 = arith.constant 5.000000e-01 : f32
    %169 = vector.broadcast %cst_59 : f32 to vector<8x128xf32>
    %170 = arith.mulf %169, %168 : vector<8x128xf32>
    %171 = math.tanh %170 : vector<8x128xf32>
    %cst_60 = arith.constant 5.000000e-01 : f32
    %172 = vector.broadcast %cst_60 : f32 to vector<8x128xf32>
    %173 = arith.mulf %172, %171 : vector<8x128xf32>
    %cst_61 = arith.constant 5.000000e-01 : f32
    %174 = vector.broadcast %cst_61 : f32 to vector<8x128xf32>
    %175 = arith.addf %173, %174 : vector<8x128xf32>
    %176 = vector.extract_strided_slice %159 {offsets = [0, 256], sizes = [8, 128], strides = [1, 1]} : vector<8x512xf32> to vector<8x128xf32>
    %177 = math.tanh %176 : vector<8x128xf32>
    %178 = vector.extract_strided_slice %159 {offsets = [0, 384], sizes = [8, 128], strides = [1, 1]} : vector<8x512xf32> to vector<8x128xf32>
    %cst_62 = arith.constant 5.000000e-01 : f32
    %179 = vector.broadcast %cst_62 : f32 to vector<8x128xf32>
    %180 = arith.mulf %179, %178 : vector<8x128xf32>
    %181 = math.tanh %180 : vector<8x128xf32>
    %cst_63 = arith.constant 5.000000e-01 : f32
    %182 = vector.broadcast %cst_63 : f32 to vector<8x128xf32>
    %183 = arith.mulf %182, %181 : vector<8x128xf32>
    %cst_64 = arith.constant 5.000000e-01 : f32
    %184 = vector.broadcast %cst_64 : f32 to vector<8x128xf32>
    %185 = arith.addf %183, %184 : vector<8x128xf32>
    %186 = arith.mulf %175, %153 : vector<8x128xf32>
    %187 = arith.mulf %167, %177 : vector<8x128xf32>
    %188 = arith.addf %186, %187 : vector<8x128xf32>
    %189 = math.tanh %188 : vector<8x128xf32>
    %190 = arith.mulf %185, %189 : vector<8x128xf32>
    %191 = arith.addi %11, %c3_i32 : i32
    %192 = vector.broadcast %191 : i32 to vector<8x1xi32>
    %193 = arith.cmpi sgt, %13, %192 : vector<8x1xi32>
    %194 = vector.shape_cast %193 : vector<8x1xi1> to vector<8x1xi1>
    %195 = vector.broadcast %194 : vector<8x1xi1> to vector<8x128xi1>
    %196 = arith.select %195, %190, %150 : vector<8x128xi1>, vector<8x128xf32>
    %197 = vector.shape_cast %193 : vector<8x1xi1> to vector<8x1xi1>
    %198 = vector.broadcast %197 : vector<8x1xi1> to vector<8x128xi1>
    %199 = arith.select %198, %188, %153 : vector<8x128xi1>, vector<8x128xf32>
    %c4_i32_65 = arith.constant 4 : i32
    %c0_66 = arith.constant 0 : index
    %c0_67 = arith.constant 0 : index
    %200 = vector.load %arg7[%c0_66, %c0_67] : memref<8x128xf32, #tpu.memory_space<vmem>>, vector<8x128xf32>
    tpu.vector_store %arg7[%c0_66, %c0_67], %196 {strides = array<i32>} : memref<8x128xf32, #tpu.memory_space<vmem>>, vector<8x128xf32>,
    %c0_68 = arith.constant 0 : index
    %c0_69 = arith.constant 0 : index
    %201 = vector.load %arg8[%c0_68, %c0_69] : memref<8x128xf32, #tpu.memory_space<vmem>>, vector<8x128xf32>
    tpu.vector_store %arg8[%c0_68, %c0_69], %199 {strides = array<i32>} : memref<8x128xf32, #tpu.memory_space<vmem>>, vector<8x128xf32>,
    return
  }
  func.func @transform_0(%arg0: i32, %arg1: i32) -> (i32, i32) {
    %c0_i32 = arith.constant 0 : i32
    %c0_i32_0 = arith.constant 0 : i32
    return %arg0, %c0_i32 : i32, i32
  }
  func.func @transform_1(%arg0: i32, %arg1: i32) -> (i32, i32, i32) {
    %c0_i32 = arith.constant 0 : i32
    %c0_i32_0 = arith.constant 0 : i32
    return %arg1, %arg0, %c0_i32 : i32, i32, i32
  }
  func.func @transform_2(%arg0: i32, %arg1: i32) -> (i32, i32) {
    %c0_i32 = arith.constant 0 : i32
    %c0_i32_0 = arith.constant 0 : i32
    %c0_i32_1 = arith.constant 0 : i32
    return %c0_i32, %c0_i32_0 : i32, i32
  }
  func.func @transform_3(%arg0: i32, %arg1: i32) -> (i32, i32) {
    %c0_i32 = arith.constant 0 : i32
    %c0_i32_0 = arith.constant 0 : i32
    %c0_i32_1 = arith.constant 0 : i32
    return %c0_i32, %c0_i32_0 : i32, i32
  }
  func.func @transform_4(%arg0: i32, %arg1: i32) -> (i32, i32) {
    %c0_i32 = arith.constant 0 : i32
    %c0_i32_0 = arith.constant 0 : i32
    %c0_i32_1 = arith.constant 0 : i32
    return %c0_i32, %c0_i32_0 : i32, i32
  }
  func.func @transform_5(%arg0: i32, %arg1: i32) -> (i32, i32) {
    %c0_i32 = arith.constant 0 : i32
    %c0_i32_0 = arith.constant 0 : i32
    return %arg0, %c0_i32 : i32, i32
  }
}

</mosaic_0001>

<bundles_post_ra>
// kernel: tpu_custom_call.1
= control target key start
LH: loop header
LB: loop body
LE: loop exit
PB: predicated region body
PF: predicated region fallthrough
CT: control target
= control target key end

     0   :  { %10 = vsyncpa [#allocation5], 0  ;;  %s2467_s0 = inlined_call_operand.vmem [shape: s32[8,1], index: 0, kind: input, shape index: {}]   ;;  %s2468_s1 = inlined_call_operand.hbm [shape: f32[8,8,32], index: 1, kind: input, shape index: {}]   ;;  %s2469_s2 = inlined_call_operand.hbm [shape: f32[32,512], index: 2, kind: input, shape index: {}]   ;;  %s2470_s3 = inlined_call_operand.hbm [shape: f32[128,512], index: 3, kind: input, shape index: {}]   ;;  %s2471_s4 = inlined_call_operand.vmem [shape: f32[1,512], index: 4, kind: input, shape index: {}]   ;;  %s2472_s5 = inlined_call_operand.hbm [shape: f32[8,128], index: 5, kind: output, shape index: {}]  }
   0x1   :  { %12 = vsyncpa [#allocation5 + $0x1], 0 }
   0x2   :  { %13 = vsyncpa [#allocation8], 0 }
   0x3   :  { %14 = vsyncpa [#allocation6], 0  ;;  %s1820_s18 = smov 0   ;;  %s1822_s19 = smov 0  }
   0x4   :  { %s1824_s20 = smov 0   ;;  %s1826_s21 = smov 0  }
   0x5   :  { %s1828_s22 = smov 0   ;;  %s1830_s23 = smov 0  }
   0x6 LB: > { %s1455_s24 = sadd.s32 4294967295, %s1777_s23   ;;  %p80_p0 = scmp.ne.s32.totalorder %s1761_s19, %s1757_s18  ;;  %s1777_s23 = sphi %s1830_s23, %s20_s23   ;;  %s1773_s22 = sphi %s1828_s22, %s2654_s22   ;;  %s1769_s21 = sphi %s1826_s21, %s2653_s21   ;;  %s1765_s20 = sphi %s1824_s20, %s2652_s20   ;;  %s1761_s19 = sphi %s1822_s19, %s2651_s19   ;;  %s1757_s18 = sphi %s1820_s18, %s2650_s18  }
   0x7   : > { %p1852_p1 = scmp.eq.s32.totalorder %s1455_s24, 0  ;;  %p1456_p2 = scmp.ge.s32.totalorder %s1777_s23, 1 }
   0x8   : > { %p180_p3 = scmp.lt.s32.totalorder %s1777_s23, 3  ;;  %s1779_s28 = smov [#allocation7]  }
   0x9   : > { %s2533_s25 = scalar_select %p1852_p1, 1, 0 }
   0xa   : > { %p1860_p4 = por %p1852_p1, %p80_p0  ;;  %p1864_p5 = pnand %p1456_p2, %p180_p3 }
   0xb   : > { %s199_s29 = sshll.u32 %s1779_s28, 4  ;;  %s1780_s6 = smov [#allocation9]   ;;  %s200_s29 = int_to_ptr.vmem [resolvable:$true] %s199_s29 }
   0xc   : > { %p1497_p6 = pneg %p1864_p5  ;;  %s212_s7 = sshll.u32 %s1780_s6, 4  ;;  %s213_s7 = int_to_ptr.vmem [resolvable:$true] %s212_s7 }
   0xd   : > { %s1626_s8 = scalar_lea.vmem %s200_s29, 2048  ;;  %p1634_p12 = scmp.lt.s32.totalorder %s200_s29, %s200_s29 }
   0xe   : > { %p1872_p7 = pnand %p1497_p6, %p1852_p1  ;;  %p1627_p9 = scmp.ne.s32.totalorder %s200_s29, %s1626_s8 }
   0xf   : > { %p1635_p13 = scmp.lt.s32.totalorder %s1626_s8, %s1626_s8 }
  0x10   : > { %p1617_p8 = pneg %p1872_p7 }
  0x11   : > { %p1636_p0 = por %p1635_p13, %p1634_p12 }
  0x12   : > { %p1629_p10 = pnand %p1627_p9, %p1617_p8 }
  0x14   : > { %p1630_p11 = pneg %p1629_p10 }
  0x16   : > { %p1637_p2 = pnand %p1636_p0, %p1630_p11 }
  0x18   : > { %1640 = shalt.err (!%p1637_p2)
}
  0x19   : > { %s1781_s9 = smov 512   ;;  %s1782_s10 = smov 32  }
  0x1a   : > { %1500 = dma.hbm_to_vmem [thread:$0]  (!%p1872_p7), %s2469_s2, 2048, %s200_s29, [#allocation8], %s1781_s9, %s1781_s9, %s1782_s10  }
  0x1b   : > { %s1652_s13 = scalar_lea.vmem %s213_s7, 8192  ;;  %p1660_p10 = scmp.lt.s32.totalorder %s213_s7, %s213_s7 }
  0x1c   : > { %p1653_p3 = scmp.ne.s32.totalorder %s213_s7, %s1652_s13  ;;  %p1661_p1 = scmp.lt.s32.totalorder %s1652_s13, %s1652_s13 }
  0x1e   : > { %p1655_p6 = pnand %p1653_p3, %p1617_p8  ;;  %p1662_p12 = por %p1661_p1, %p1660_p10 }
  0x20   : > { %p1656_p9 = pneg %p1655_p6 }
  0x22   : > { %p1663_p11 = pnand %p1662_p12, %p1656_p9 }
  0x24   : > { %1666 = shalt.err (!%p1663_p11)
}
  0x25   : > { %1503 = dma.hbm_to_vmem [thread:$0]  (!%p1872_p7), %s2470_s3, 8192, %s213_s7, [#allocation8], %s1781_s9, %s1781_s9, %s1782_s10  }
  0x26   : > { %s29_s16 = sadd.s32 1, %s1773_s22  ;;  %s67_s17 = sadd.s32 1, %s1765_s20 }
  0x27   : > { %p30_p1 = scmp.ge.s32.totalorder %s29_s16, 2  ;;  %p74_p8 = scmp.ne.s32.totalorder %s1765_s20, %s1761_s19 }
  0x28   : > { %p75_p13 = scmp.eq.s32.totalorder %s1777_s23, 0  ;;  %p1510_p0 = scmp.lt.s32.totalorder %s1777_s23, 2 }
  0x29   : > { %s2656_s16 = smov (%p30_p1, %s29_s16), 0  ;;  %s229_s18 = sand.u32 1, %s1765_s20  }
  0x2a   : > { %p76_p2 = por %p75_p13, %p74_p8  ;;  %s62_s28 = ssub.s32 %s1773_s22, %s2656_s16 }
  0x2b   : > { %p65_p3 = scmp.eq.s32.totalorder %s62_s28, 0  ;;  %s1461_s29 = sshll.u32 %s229_s18, 5 }
  0x2c   : > { %s1482_s30 = sshll.u32 %s1773_s22, 9  ;;  %s233_s10 = scalar_lea.vmem [#allocation4], %s1461_s29 }
  0x2d   : > { %s1907_s6 = scalar_select %p65_p3, %s1765_s20, %s67_s17  }
  0x2e   : > { %s240_s9 = scalar_lea.hbm %s2468_s1, %s1482_s30  ;;  %s241_s11 = sshll.u32 %s233_s10, 4  ;;  %s242_s11 = int_to_ptr.vmem [resolvable:$true] %s241_s11 }
  0x2f   : > { %p1914_p7 = pnand %p1510_p0, %p76_p2  ;;  %s230_s13 = scalar_lea.sflag [#allocation5], %s229_s18 }
  0x30   : > { %s1680_s14 = scalar_lea.vmem %s242_s11, 512  ;;  %s1783_s15 = smov [#allocation4]  }
  0x31   : > { %p1669_p6 = pneg %p1914_p7  ;;  %p1681_p9 = scmp.ne.s32.totalorder %s242_s11, %s1680_s14 }
  0x32   : > { %s1685_s17 = sshll.u32 %s1783_s15, 4  ;;  %s1686_s17 = int_to_ptr.vmem [resolvable:$false] %s1685_s17 }
  0x33   : > { %p1683_p10 = pnand %p1681_p9, %p1669_p6  ;;  %s1687_s28 = scalar_lea.vmem %s1686_s17, 1024 }
  0x34   : > { %p1688_p11 = scmp.lt.s32.totalorder %s242_s11, %s1686_s17  ;;  %p1689_p1 = scmp.lt.s32.totalorder %s1687_s28, %s1680_s14 }
  0x35   : > { %p1684_p12 = pneg %p1683_p10 }
  0x36   : > { %p1690_p8 = por %p1689_p1, %p1688_p11 }
  0x38   : > { %p1691_p13 = pnand %p1690_p8, %p1684_p12 }
  0x3a   : > { %1694 = shalt.err (!%p1691_p13)
}
  0x3b   : > { %s1784_s29 = smov 128   ;;  %s1785_s30 = smov 8  }
  0x3c   : > { %1507 = dma.hbm_to_vmem [thread:$0]  (!%p1914_p7), %s240_s9, 512, %s242_s11, %s230_s13, %s1784_s29, %s1784_s29, %s1785_s30  }
  0x3d   : > { %253 = sbr.rel (%p1864_p5) target bundleno = 1089 (0x441), region = 40 }
  0x42   : > { %s255_s18 = sand.u32 1, %s1761_s19  }
  0x43   : > { %s1465_s8 = sshll.u32 %s255_s18, 5  ;;  %s256_s7 = scalar_lea.sflag [#allocation5], %s255_s18 }
  0x44   : > { %s1925_s10 = scalar_lea.vmem [#allocation4], %s1465_s8 }
  0x45   : > { %1744 = dma.done.wait (%p1860_p4), %s256_s7, 512  }
  0x46   : > { %1746 = vsyncadd (%p1860_p4), %s256_s7, 4294966784  ;;  %p2538_p0 = scmp.ne.s32.totalorder %s2533_s25, 0 }
  0x48   : > { %1748 = dma.done.wait (%p2538_p0), [#allocation8], 10240  }
  0x49   : > { %1750 = vsyncadd (%p2538_p0), [#allocation8], 4294957056  ;;  %p1468_p5 = scmp.ne.s32.totalorder %s1769_s21, 0 }
  0x4b   : > { %301 = sbr.rel (%p1468_p5) target bundleno = 82 (0x52), region = 56 }
  0x50   : > { %v1786_v0 = vmov 0.0  }
  0x51   : > { %302 = vst [vmem:[#allocation10] sm:$0xff] %v1786_v0  ;;  %303 = vst [vmem:[#allocation2] sm:$0xff] %v1786_v0 }
  0x52 PF: > { %v321_v1 = vld [vmem:[#allocation7 + $0x68] sm:$0xff]  ;;  %v323_v2 = vld [vmem:[#allocation7 + $0x78] sm:$0xff]  ;;  %v320_v3 = vld [vmem:[#allocation7 + $0x60] sm:$0xff]  ;;  %vm346_vm0 = vcmask 261120   ;;  %v2479_v19 = vmov 0.0   ;;  %s2115_s25 = sshll.u32 %s1769_s21, 2 }
  0x53   : > { %383 = vmatprep.subr.mxu0 %v321_v1  ;;  %472 = vmatprep.subr.mxu1 %v323_v2  ;;  %v322_v4 = vld [vmem:[#allocation7 + $0x70] sm:$0xff]  ;;  %v317_v5 = vld [vmem:[#allocation7 + $0x48] sm:$0xff]  ;;  %v319_v6 = vld [vmem:[#allocation7 + $0x58] sm:$0xff]  ;;  %s972_s27 = sadd.s32 1, %s2115_s25  ;;  %s1153_s12 = sadd.s32 2, %s2115_s25 }
  0x54   : > { %384 = vmatpush1.msra.mxu0 %v320_v3  ;;  %473 = vmatpush1.msra.mxu1 %v322_v4  ;;  %v316_v7 = vld [vmem:[#allocation7 + $0x40] sm:$0xff]  ;;  %v318_v8 = vld [vmem:[#allocation7 + $0x50] sm:$0xff]  ;;  %v313_v9 = vld [vmem:[#allocation7 + $0x28] sm:$0xff]  ;;  %s1334_s13 = sadd.s32 3, %s2115_s25  ;;  %s1789_s14 = smov [#allocation10]  }
  0x55   : > { %385 = vmatprep.subr.mxu0 %v317_v5  ;;  %474 = vmatprep.subr.mxu1 %v319_v6  ;;  %v315_v10 = vld [vmem:[#allocation7 + $0x38] sm:$0xff]  ;;  %v312_v11 = vld [vmem:[#allocation7 + $0x20] sm:$0xff]  ;;  %v314_v12 = vld [vmem:[#allocation7 + $0x30] sm:$0xff]  ;;  %s1355_s15 = sshll.u32 %s1789_s14, 4  ;;  %p2434_p4 = scmp.eq.s32.totalorder %s1455_s24, 1  ;;  %s1356_s15 = int_to_ptr.vmem [resolvable:$true] %s1355_s15 }
  0x56   : > { %386 = vmatpush1.msra.mxu0 %v316_v7  ;;  %475 = vmatpush1.msra.mxu1 %v318_v8  ;;  %v309_v13 = vld [vmem:[#allocation7 + $0x8] sm:$0xff]  ;;  %v311_v14 = vld [vmem:[#allocation7 + $0x18] sm:$0xff]  ;;  %v308_v15 = vld [vmem:[#allocation7] sm:$0xff]  ;;  %s1695_s28 = scalar_lea.vmem %s1356_s15, 128  ;;  %p1702_p6 = scmp.lt.s32.totalorder %s1356_s15, %s1356_s15 }
  0x57   : > { %387 = vmatprep.subr.mxu0 %v313_v9  ;;  %476 = vmatprep.subr.mxu1 %v315_v10  ;;  %v310_v16 = vld [vmem:[#allocation7 + $0x10] sm:$0xff]  ;;  %v304_v17 = vld [vmem:[%s1925_s10] sm:$0xff]  ;;  %v1937_v18 = vld [vmem:[#allocation9 + $0x1e8] sm:$0xff]  ;;  %p1696_p2 = scmp.ne.s32.totalorder %s1356_s15, %s1695_s28  ;;  %p1703_p9 = scmp.lt.s32.totalorder %s1695_s28, %s1695_s28 }
  0x58   : > { %388 = vmatpush1.msra.mxu0 %v312_v11  ;;  %477 = vmatpush1.msra.mxu1 %v314_v12  ;;  %2539 = vst [vmem:[#allocation14_spill] sm:$0xff] %v1937_v18  ;;  %v1940_v20 = vld [vmem:[#allocation9 + $0x1f8] sm:$0xff]  ;;  %v1943_v21 = vld [vmem:[#allocation9 + $0x1e0] sm:$0xff]  ;;  %v1945_v22 = vld [vmem:[#allocation9 + $0x1f0] sm:$0xff] }
  0x59   : > { %389 = vmatprep.subr.mxu0 %v309_v13  ;;  %478 = vmatprep.subr.mxu1 %v311_v14  ;;  %2540 = vst [vmem:[#allocation15_spill] sm:$0xff] %v1940_v20  ;;  %v1949_v23 = vld [vmem:[#allocation9 + $0x1c8] sm:$0xff]  ;;  %v1951_v24 = vld [vmem:[#allocation9 + $0x1d8] sm:$0xff]  ;;  %v1955_v25 = vld [vmem:[#allocation9 + $0x1c0] sm:$0xff]  ;;  %p1697_p3 = pnand %p1696_p2, %p2434_p4  ;;  %p1704_p10 = por %p1703_p9, %p1702_p6 }
  0x5a   : > { %390 = vmatpush1.msra.mxu0 %v308_v15  ;;  %423 = vmatprep.mubr.f32.mxu0 %v2479_v19  ;;  %v1957_v26 = vld [vmem:[#allocation9 + $0x1d0] sm:$0xff]  ;;  %v1961_v27 = vld [vmem:[#allocation9 + $0x1a8] sm:$0xff]  ;;  %v1963_v28 = vld [vmem:[#allocation9 + $0x1b8] sm:$0xff] }
  0x5b   : > { %479 = vmatpush1.msra.mxu1 %v310_v16  ;;  %1469 = vmatmul.mubr.msk.f32.vlgmr.msra.gmra.mxu0 %vm346_vm0, %v304_v17  ;;  %v1967_v29 = vld [vmem:[#allocation9 + $0x1a0] sm:$0xff]  ;;  %v1969_v30 = vld [vmem:[#allocation9 + $0x1b0] sm:$0xff]  ;;  %v1973_v31 = vld [vmem:[#allocation9 + $0x188] sm:$0xff]  ;;  %p1698_p7 = pneg %p1697_p3 }
  0x5c   : > { %512 = vmatprep.mubr.f32.mxu1 %v2479_v19  ;;  %628 = vmatprep.subr.mxu0 %v1937_v18  ;;  %v1975_v32 = vld [vmem:[#allocation9 + $0x198] sm:$0xff]  ;;  %v1979_v33 = vld [vmem:[#allocation9 + $0x180] sm:$0xff]  ;;  %v1981_v34 = vld [vmem:[#allocation9 + $0x190] sm:$0xff] }
  0x5d   : > { %699 = vmatprep.subr.mxu1 %v1940_v20  ;;  %1473 = vmatmul.mubr.msk.f32.vlgmr.msra.gmra.mxu1 %vm346_vm0, %v304_v17  ;;  %v1985_v35 = vld [vmem:[#allocation9 + $0x168] sm:$0xff]  ;;  %v1987_v36 = vld [vmem:[#allocation9 + $0x178] sm:$0xff]  ;;  %v1991_v37 = vld [vmem:[#allocation9 + $0x160] sm:$0xff]  ;;  %p1705_p12 = pnand %p1704_p10, %p1698_p7 }
  0x5e   : > { %629 = vmatpush1.msra.mxu0 %v1943_v21  ;;  %700 = vmatpush1.msra.mxu1 %v1945_v22  ;;  %v1993_v38 = vld [vmem:[#allocation9 + $0x170] sm:$0xff]  ;;  %v1997_v39 = vld [vmem:[#allocation9 + $0x148] sm:$0xff]  ;;  %v1999_v40 = vld [vmem:[#allocation9 + $0x158] sm:$0xff] }
  0x5f   : > { %630 = vmatprep.subr.mxu0 %v1949_v23  ;;  %701 = vmatprep.subr.mxu1 %v1951_v24  ;;  %v2003_v41 = vld [vmem:[#allocation9 + $0x140] sm:$0xff]  ;;  %v2005_v42 = vld [vmem:[#allocation9 + $0x150] sm:$0xff]  ;;  %v2009_v43 = vld [vmem:[#allocation9 + $0x128] sm:$0xff] }
  0x60   : > { %631 = vmatpush1.msra.mxu0 %v1955_v25  ;;  %702 = vmatpush1.msra.mxu1 %v1957_v26  ;;  %v2011_v44 = vld [vmem:[#allocation9 + $0x138] sm:$0xff]  ;;  %v2015_v45 = vld [vmem:[#allocation9 + $0x120] sm:$0xff]  ;;  %v2017_v46 = vld [vmem:[#allocation9 + $0x130] sm:$0xff] }
  0x61   : > { %632 = vmatprep.subr.mxu0 %v1961_v27  ;;  %703 = vmatprep.subr.mxu1 %v1963_v28  ;;  %v2021_v47 = vld [vmem:[#allocation9 + $0x108] sm:$0xff]  ;;  %v2023_v48 = vld [vmem:[#allocation9 + $0x118] sm:$0xff]  ;;  %v2027_v49 = vld [vmem:[#allocation9 + $0x100] sm:$0xff] }
  0x62   : > { %633 = vmatpush1.msra.mxu0 %v1967_v29  ;;  %704 = vmatpush1.msra.mxu1 %v1969_v30  ;;  %v2029_v50 = vld [vmem:[#allocation9 + $0x110] sm:$0xff]  ;;  %v2033_v51 = vld [vmem:[#allocation9 + $0xe8] sm:$0xff]  ;;  %v2035_v52 = vld [vmem:[#allocation9 + $0xf8] sm:$0xff] }
  0x63   : > { %634 = vmatprep.subr.mxu0 %v1973_v31  ;;  %705 = vmatprep.subr.mxu1 %v1975_v32  ;;  %v2039_v53 = vld [vmem:[#allocation9 + $0xe0] sm:$0xff]  ;;  %v2043_v54 = vld [vmem:[#allocation9 + $0xf0] sm:$0xff]  ;;  %v305_v55 = vld [vmem:[%s1925_s10 + $0x8] sm:$0xff] }
  0x64   : > { %635 = vmatpush1.msra.mxu0 %v1979_v33  ;;  %706 = vmatpush1.msra.mxu1 %v1981_v34  ;;  %v2048_v56 = vld [vmem:[#allocation9 + $0xc8] sm:$0xff]  ;;  %v2050_v57 = vld [vmem:[#allocation9 + $0xd8] sm:$0xff]  ;;  %v2054_v58 = vld [vmem:[#allocation9 + $0xc0] sm:$0xff] }
  0x65   : > { %636 = vmatprep.subr.mxu0 %v1985_v35  ;;  %707 = vmatprep.subr.mxu1 %v1987_v36  ;;  %v2058_v59 = vld [vmem:[#allocation9 + $0xd0] sm:$0xff]  ;;  %v2060_v60 = vld [vmem:[#allocation9 + $0xa8] sm:$0xff]  ;;  %v2064_v61 = vld [vmem:[#allocation9 + $0xb8] sm:$0xff] }
  0x66   : > { %637 = vmatpush1.msra.mxu0 %v1991_v37  ;;  %708 = vmatpush1.msra.mxu1 %v1993_v38  ;;  %2541 = vst [vmem:[#allocation16_spill] sm:$0xff] %v2060_v60  ;;  %2542 = vst [vmem:[#allocation17_spill] sm:$0xff] %v2064_v61  ;;  %v2068_v62 = vld [vmem:[#allocation9 + $0xa0] sm:$0xff]  ;;  %v2072_v63 = vld [vmem:[#allocation9 + $0xb0] sm:$0xff] }
  0x67   : > { %638 = vmatprep.subr.mxu0 %v1997_v39  ;;  %709 = vmatprep.subr.mxu1 %v1999_v40  ;;  %2543 = vst [vmem:[#allocation18_spill] sm:$0xff] %v2068_v62  ;;  %2544 = vst [vmem:[#allocation19_spill] sm:$0xff] %v2072_v63  ;;  %v306_v0 = vld [vmem:[%s1925_s10 + $0x10] sm:$0xff]  ;;  %v2077_v1 = vld [vmem:[#allocation9 + $0x88] sm:$0xff] }
  0x68   : > { %639 = vmatpush1.msra.mxu0 %v2003_v41  ;;  %710 = vmatpush1.msra.mxu1 %v2005_v42  ;;  %2545 = vst [vmem:[#allocation20_spill] sm:$0xff] %v2077_v1  ;;  %v2079_v2 = vld [vmem:[#allocation9 + $0x98] sm:$0xff]  ;;  %v2083_v3 = vld [vmem:[#allocation9 + $0x80] sm:$0xff]  ;;  %v2087_v4 = vld [vmem:[#allocation9 + $0x90] sm:$0xff] }
  0x69   : > { %640 = vmatprep.subr.mxu0 %v2009_v43  ;;  %711 = vmatprep.subr.mxu1 %v2011_v44  ;;  %2546 = vst [vmem:[#allocation21_spill] sm:$0xff] %v2079_v2  ;;  %2547 = vst [vmem:[#allocation22_spill] sm:$0xff] %v2083_v3  ;;  %v2089_v5 = vld [vmem:[#allocation9 + $0x68] sm:$0xff]  ;;  %v2093_v6 = vld [vmem:[#allocation9 + $0x78] sm:$0xff] }
  0x6a   : > { %641 = vmatpush1.msra.mxu0 %v2015_v45  ;;  %712 = vmatpush1.msra.mxu1 %v2017_v46  ;;  %2548 = vst [vmem:[#allocation23_spill] sm:$0xff] %v2087_v4  ;;  %2549 = vst [vmem:[#allocation24_spill] sm:$0xff] %v2089_v5  ;;  %v2097_v7 = vld [vmem:[#allocation9 + $0x60] sm:$0xff]  ;;  %v2101_v8 = vld [vmem:[#allocation9 + $0x70] sm:$0xff] }
  0x6b   : > { %642 = vmatprep.subr.mxu0 %v2021_v47  ;;  %713 = vmatprep.subr.mxu1 %v2023_v48  ;;  %2550 = vst [vmem:[#allocation25_spill] sm:$0xff] %v2093_v6  ;;  %2551 = vst [vmem:[#allocation26_spill] sm:$0xff] %v2097_v7  ;;  %v307_v9 = vld [vmem:[%s1925_s10 + $0x18] sm:$0xff]  ;;  %v2106_v10 = vld [vmem:[#allocation9 + $0x48] sm:$0xff] }
  0x6c   : > { %643 = vmatpush1.msra.mxu0 %v2027_v49  ;;  %714 = vmatpush1.msra.mxu1 %v2029_v50  ;;  %2552 = vst [vmem:[#allocation27_spill] sm:$0xff] %v2101_v8  ;;  %2553 = vst [vmem:[#allocation28_spill] sm:$0xff] %v2106_v10  ;;  %v2108_v11 = vld [vmem:[#allocation9 + $0x58] sm:$0xff]  ;;  %v2112_v12 = vld [vmem:[#allocation9 + $0x40] sm:$0xff] }
  0x6d   : > { %644 = vmatprep.subr.mxu0 %v2033_v51  ;;  %715 = vmatprep.subr.mxu1 %v2035_v52  ;;  %2554 = vst [vmem:[#allocation29_spill] sm:$0xff] %v2108_v11  ;;  %2555 = vst [vmem:[#allocation30_spill] sm:$0xff] %v2112_v12  ;;  %v2119_v13 = vld [vmem:[#allocation9 + $0x50] sm:$0xff]  ;;  %v2121_v14 = vld [vmem:[#allocation9 + $0x28] sm:$0xff] }
  0x6e   : > { %429 = vmatprep.mubr.f32.mxu0 %v2479_v19  ;;  %645 = vmatpush1.msra.mxu0 %v2039_v53  ;;  %2556 = vst [vmem:[#allocation31_spill] sm:$0xff] %v2119_v13  ;;  %2557 = vst [vmem:[#allocation32_spill] sm:$0xff] %v2121_v14  ;;  %v2125_v15 = vld [vmem:[#allocation9 + $0x38] sm:$0xff]  ;;  %v2129_v16 = vld [vmem:[#allocation9 + $0x20] sm:$0xff] }
  0x6f   : > { %716 = vmatpush1.msra.mxu1 %v2043_v54  ;;  %1470 = vmatmul.mubr.msk.f32.gmra.mxu0 %vm346_vm0, %v305_v55  ;;  %2558 = vst [vmem:[#allocation33_spill] sm:$0xff] %v2125_v15  ;;  %2559 = vst [vmem:[#allocation34_spill] sm:$0xff] %v2129_v16  ;;  %v2131_v17 = vld [vmem:[#allocation9 + $0x30] sm:$0xff] }
  0x70   : > { %646 = vmatprep.subr.mxu0 %v2048_v56  ;;  %717 = vmatprep.subr.mxu1 %v2050_v57  ;;  %2560 = vst [vmem:[#allocation35_spill] sm:$0xff] %v2131_v17 }
  0x71   : > { %518 = vmatprep.mubr.f32.mxu1 %v2479_v19  ;;  %647 = vmatpush1.msra.mxu0 %v2054_v58 }
  0x72   : > { %718 = vmatpush1.msra.mxu1 %v2058_v59  ;;  %648 = vmatprep.subr.mxu0 %v2060_v60 }
  0x73   : > { %1474 = vmatmul.mubr.msk.f32.gmra.mxu1 %vm346_vm0, %v305_v55  ;;  %719 = vmatprep.subr.mxu1 %v2064_v61  ;;  %v2136_v55 = vld [vmem:[%s2467_s0] sm:$0xff] }
  0x74   : > { %435 = vmatprep.mubr.f32.mxu0 %v2479_v19  ;;  %649 = vmatpush1.msra.mxu0 %v2068_v62  ;;  %2561 = vst [vmem:[#allocation36_spill] sm:$0xff] %v2136_v55 }
  0x75   : > { %720 = vmatpush1.msra.mxu1 %v2072_v63  ;;  %1471 = vmatmul.mubr.msk.f32.gmra.mxu0 %vm346_vm0, %v306_v0 }
  0x76   : > { %650 = vmatprep.subr.mxu0 %v2077_v1  ;;  %721 = vmatprep.subr.mxu1 %v2079_v2 }
  0x77   : > { %524 = vmatprep.mubr.f32.mxu1 %v2479_v19  ;;  %651 = vmatpush1.msra.mxu0 %v2083_v3 }
  0x78   : > { %722 = vmatpush1.msra.mxu1 %v2087_v4  ;;  %652 = vmatprep.subr.mxu0 %v2089_v5 }
  0x79   : > { %1475 = vmatmul.mubr.msk.f32.gmra.mxu1 %vm346_vm0, %v306_v0  ;;  %723 = vmatprep.subr.mxu1 %v2093_v6  ;;  %v792_v0 = vstv %s2115_s25 }
  0x7a   : > { %441 = vmatprep.mubr.f32.mxu0 %v2479_v19  ;;  %653 = vmatpush1.msra.mxu0 %v2097_v7  ;;  %vm793_vm1 = vcmp.gt.s32.totalorder %v2136_v55, %v792_v0 }
  0x7b   : > { %724 = vmatpush1.msra.mxu1 %v2101_v8  ;;  %1472 = vmatmul.mubr.msk.f32.gmra.mxu0 %vm346_vm0, %v307_v9 }
  0x7c   : > { %654 = vmatprep.subr.mxu0 %v2106_v10  ;;  %725 = vmatprep.subr.mxu1 %v2108_v11  ;;  %v2141_v11 = vld [vmem:[#allocation9 + $0x8] sm:$0xff]  ;;  %v2143_v10 = vld [vmem:[#allocation9 + $0x18] sm:$0xff] }
  0x7d   : > { %530 = vmatprep.mubr.f32.mxu1 %v2479_v19  ;;  %655 = vmatpush1.msra.mxu0 %v2112_v12  ;;  %2562 = vst [vmem:[#allocation37_spill] sm:$0xff] %v2141_v11  ;;  %2563 = vst [vmem:[#allocation38_spill] sm:$0xff] %v2143_v10  ;;  %v2148_v19 = vld [vmem:[#allocation9] sm:$0xff]  ;;  %v2152_v12 = vld [vmem:[#allocation9 + $0x10] sm:$0xff] }
  0x7e   : > { %726 = vmatpush1.msra.mxu1 %v2119_v13  ;;  %656 = vmatprep.subr.mxu0 %v2121_v14  ;;  %2564 = vst [vmem:[#allocation39_spill] sm:$0xff] %v2148_v19  ;;  %2565 = vst [vmem:[#allocation40_spill] sm:$0xff] %v2152_v12  ;;  %v2157_v14 = vld [vmem:[#allocation10] sm:$0xff]  ;;  %v973_v13 = vstv %s972_s27 }
  0x7f   : > { %1476 = vmatmul.mubr.msk.f32.gmra.mxu1 %vm346_vm0, %v307_v9  ;;  %727 = vmatprep.subr.mxu1 %v2125_v15  ;;  %v2566_v9 = vmov 0.0   ;;  %vm974_vm2 = vcmp.gt.s32.totalorder %v2136_v55, %v973_v13  ;;  %v2567_v13 = vld [vmem:[#allocation28_spill] sm:$0xff] }
  0x80   : > { %657 = vmatpush1.msra.mxu0 %v2129_v16  ;;  %728 = vmatpush1.msra.mxu1 %v2131_v17  ;;  %v2491_v17 = vmov 0   ;;  %v2571_v55 = vld [vmem:[#allocation32_spill] sm:$0xff] }
  0x81   : > { %658 = vmatprep.subr.mxu0 %v2141_v11  ;;  %729 = vmatprep.subr.mxu1 %v2143_v10  ;;  %v794_v16 = vsel %vm793_vm1, 1, %v2491_v17  ;;  %v975_v0 = vsel %vm974_vm2, 1, %v2491_v17 }
  0x82   : > { %659 = vmatpush1.msra.mxu0 %v2148_v19  ;;  %692 = vmatprep.mubr.f32.mxu0 %v2566_v9 }
  0x83   : > { %730 = vmatpush1.msra.mxu1 %v2152_v12  ;;  %763 = vmatprep.mubr.f32.mxu1 %v2566_v9 }
  0x84   : > { %693 = vmatmul.mubr.f32.vlgmr.msra.gmra.mxu0 %v2157_v14  ;;  %764 = vmatmul.mubr.f32.vlgmr.msra.gmra.mxu1 %v2157_v14 }
  0x85   : > { %1573 = vset.pattern.permute.xlu0 %v2491_v17  ;;  %808 = vmatprep.subr.mxu0 %v1937_v18  ;;  %v2570_v17 = vld [vmem:[#allocation31_spill] sm:$0xff] }
  0x86   : > { %796 = vperm.xlu0 %1573, %v794_v16   ;;  %879 = vmatprep.subr.mxu1 %v1940_v20  ;;  %v2568_v16 = vld [vmem:[#allocation29_spill] sm:$0xff] }
  0x87   : > { %809 = vmatpush1.msra.mxu0 %v1943_v21  ;;  %880 = vmatpush1.msra.mxu1 %v1945_v22 }
  0x88   : > { %810 = vmatprep.subr.mxu0 %v1949_v23  ;;  %881 = vmatprep.subr.mxu1 %v1951_v24 }
  0x89   : > { %811 = vmatpush1.msra.mxu0 %v1955_v25  ;;  %882 = vmatpush1.msra.mxu1 %v1957_v26 }
  0x8a   : > { %977 = vperm.xlu0 %1573, %v975_v0   ;;  %812 = vmatprep.subr.mxu0 %v1961_v27  ;;  %v2569_v0 = vld [vmem:[#allocation30_spill] sm:$0xff] }
  0x8b   : > { %883 = vmatprep.subr.mxu1 %v1963_v28  ;;  %813 = vmatpush1.msra.mxu0 %v1967_v29 }
  0x8c   : > { %884 = vmatpush1.msra.mxu1 %v1969_v30  ;;  %814 = vmatprep.subr.mxu0 %v1973_v31 }
  0x8d   : > { %885 = vmatprep.subr.mxu1 %v1975_v32  ;;  %815 = vmatpush1.msra.mxu0 %v1979_v33 }
  0x8e   : > { %886 = vmatpush1.msra.mxu1 %v1981_v34  ;;  %816 = vmatprep.subr.mxu0 %v1985_v35 }
  0x8f   : > { %887 = vmatprep.subr.mxu1 %v1987_v36  ;;  %817 = vmatpush1.msra.mxu0 %v1991_v37 }
  0x90   : > { %888 = vmatpush1.msra.mxu1 %v1993_v38  ;;  %818 = vmatprep.subr.mxu0 %v1997_v39 }
  0x91   : > { %889 = vmatprep.subr.mxu1 %v1999_v40  ;;  %819 = vmatpush1.msra.mxu0 %v2003_v41 }
  0x92   : > { %890 = vmatpush1.msra.mxu1 %v2005_v42  ;;  %820 = vmatprep.subr.mxu0 %v2009_v43 }
  0x93   : > { %891 = vmatprep.subr.mxu1 %v2011_v44  ;;  %821 = vmatpush1.msra.mxu0 %v2015_v45 }
  0x94   : > { %892 = vmatpush1.msra.mxu1 %v2017_v46  ;;  %822 = vmatprep.subr.mxu0 %v2021_v47 }
  0x95   : > { %893 = vmatprep.subr.mxu1 %v2023_v48  ;;  %823 = vmatpush1.msra.mxu0 %v2027_v49 }
  0x96   : > { %894 = vmatpush1.msra.mxu1 %v2029_v50  ;;  %824 = vmatprep.subr.mxu0 %v2033_v51 }
  0x97   : > { %895 = vmatprep.subr.mxu1 %v2035_v52  ;;  %825 = vmatpush1.msra.mxu0 %v2039_v53 }
  0x98   : > { %896 = vmatpush1.msra.mxu1 %v2043_v54  ;;  %826 = vmatprep.subr.mxu0 %v2048_v56 }
  0x99   : > { %897 = vmatprep.subr.mxu1 %v2050_v57  ;;  %827 = vmatpush1.msra.mxu0 %v2054_v58 }
  0x9a   : > { %898 = vmatpush1.msra.mxu1 %v2058_v59  ;;  %828 = vmatprep.subr.mxu0 %v2060_v60 }
  0x9b   : > { %899 = vmatprep.subr.mxu1 %v2064_v61  ;;  %829 = vmatpush1.msra.mxu0 %v2068_v62 }
  0x9c   : > { %900 = vmatpush1.msra.mxu1 %v2072_v63  ;;  %830 = vmatprep.subr.mxu0 %v2077_v1 }
  0x9d   : > { %901 = vmatprep.subr.mxu1 %v2079_v2  ;;  %831 = vmatpush1.msra.mxu0 %v2083_v3 }
  0x9e   : > { %902 = vmatpush1.msra.mxu1 %v2087_v4  ;;  %832 = vmatprep.subr.mxu0 %v2089_v5  ;;  %v2572_v4 = vld [vmem:[#allocation34_spill] sm:$0xff]  ;;  %v2573_v5 = vld [vmem:[#allocation35_spill] sm:$0xff] }
  0x9f   : > { %903 = vmatprep.subr.mxu1 %v2093_v6  ;;  %833 = vmatpush1.msra.mxu0 %v2097_v7 }
  0xa0   : > { %904 = vmatpush1.msra.mxu1 %v2101_v8  ;;  %834 = vmatprep.subr.mxu0 %v2567_v13 }
  0xa1   : > { %905 = vmatprep.subr.mxu1 %v2568_v16  ;;  %835 = vmatpush1.msra.mxu0 %v2569_v0 }
  0xa2   : > { %906 = vmatpush1.msra.mxu1 %v2570_v17  ;;  %836 = vmatprep.subr.mxu0 %v2571_v55 }
  0xa3   : > { %907 = vmatprep.subr.mxu1 %v2125_v15  ;;  %837 = vmatpush1.msra.mxu0 %v2572_v4  ;;  %v2574_v15 = vmov 0   ;;  %v326_v4 = vlaneseq }
  0xa4   : > { %908 = vmatpush1.msra.mxu1 %v2573_v5  ;;  %838 = vmatprep.subr.mxu0 %v2141_v11 }
  0xa5   : > { %909 = vmatprep.subr.mxu1 %v2143_v10  ;;  %839 = vmatpush1.msra.mxu0 %v2148_v19  ;;  %v327_v5 = vshrl.u32 %v326_v4, 7  ;;  %v324_v19 = vld [vmem:[%s2471_s4] sm:$0xf] }
  0xa6   : > { %872 = vmatprep.mubr.f32.mxu0 %v2566_v9  ;;  %910 = vmatpush1.msra.mxu1 %v2152_v12 }
  0xa7   : > { %943 = vmatprep.mubr.f32.mxu1 %v2566_v9  ;;  %989 = vmatprep.subr.mxu0 %v1937_v18  ;;  %v328_v11 = vsub.s32 0, %v327_v5  ;;  %v332_v10 = vsub.s32 1, %v327_v5  ;;  %v336_v16 = vsub.s32 2, %v327_v5  ;;  %v340_v18 = vsub.s32 3, %v327_v5 }
  0xa8   : > { %1060 = vmatprep.subr.mxu1 %v1940_v20  ;;  %1574 = vset.pattern.permute.xlu1 %v2574_v15 }
  0xa9   : > { %v329_v12 = vrot.slane %v324_v19, %v328_v11  ;;  %v333_v13 = vrot.slane %v324_v19, %v332_v10  ;;  %v337_v7 = vrot.slane %v324_v19, %v336_v16  ;;  %v341_v3 = vrot.slane %v324_v19, %v340_v18 }
 0x11b   : > { %v425_v55 = vpop.f32.mrf.mxu0 }
 0x11d   : > { %v427_v17 = vpop.f32.mrf.mxu0  ;;  %v514_v0 = vpop.f32.mrf.mxu1 }
 0x11f   : > { %v516_v20 = vpop.f32.mrf.mxu1 }
 0x12f   : > { %v431_v9 = vpop.f32.mrf.mxu0 }
 0x130   : > { %v2241_v8 = vadd.f32 %v431_v9, %v329_v12 }
 0x131   : > { %v433_v15 = vpop.f32.mrf.mxu0 }
 0x132   : > { %2575 = vst [vmem:[#allocation41_spill] sm:$0xff] %v2241_v8  ;;  %v2243_v4 = vadd.f32 %v433_v15, %v333_v13 }
 0x133   : > { %v520_v6 = vpop.f32.mrf.mxu1 }
 0x134   : > { %2576 = vst [vmem:[#allocation42_spill] sm:$0xff] %v2243_v4  ;;  %v2245_v2 = vadd.f32 %v520_v6, %v337_v7 }
 0x135   : > { %v437_v1 = vpop.f32.mrf.mxu0  ;;  %v522_v63 = vpop.f32.mrf.mxu1 }
 0x136   : > { %2577 = vst [vmem:[#allocation43_spill] sm:$0xff] %v2245_v2  ;;  %v2247_v62 = vadd.f32 %v437_v1, %v329_v12  ;;  %v2249_v11 = vadd.f32 %v522_v63, %v341_v3 }
 0x137   : > { %v439_v61 = vpop.f32.mrf.mxu0 }
 0x138   : > { %2578 = vst [vmem:[#allocation44_spill] sm:$0xff] %v2247_v62  ;;  %2579 = vst [vmem:[#allocation45_spill] sm:$0xff] %v2249_v11  ;;  %v2251_v10 = vadd.f32 %v439_v61, %v333_v13  ;;  %v426_v61 = vadd.f32 %v425_v55, %v329_v12  ;;  %v428_v11 = vadd.f32 %v427_v17, %v333_v13 }
 0x139   : > { %v526_v5 = vpop.f32.mrf.mxu1 }
 0x13a   : > { %2580 = vst [vmem:[#allocation46_spill] sm:$0xff] %v2251_v10  ;;  %v2253_v9 = vadd.f32 %v526_v5, %v337_v7 }
 0x13b   : > { %v443_v8 = vpop.f32.mrf.mxu0  ;;  %v528_v16 = vpop.f32.mrf.mxu1 }
 0x13c   : > { %2581 = vst [vmem:[#allocation47_spill] sm:$0xff] %v2253_v9  ;;  %v2255_v15 = vadd.f32 %v443_v8, %v329_v12  ;;  %v2257_v4 = vadd.f32 %v528_v16, %v341_v3 }
 0x13d   : > { %v445_v18 = vpop.f32.mrf.mxu0 }
 0x13e   : > { %2582 = vst [vmem:[#allocation48_spill] sm:$0xff] %v2255_v15  ;;  %2583 = vst [vmem:[#allocation49_spill] sm:$0xff] %v2257_v4  ;;  %v2259_v19 = vadd.f32 %v445_v18, %v333_v13  ;;  %v515_v15 = vadd.f32 %v514_v0, %v337_v7  ;;  %v620_v13 = vld [vmem:[#allocation2] sm:$0xff] }
 0x13f   : > { %v532_v6 = vpop.f32.mrf.mxu1 }
 0x140   : > { %2584 = vst [vmem:[#allocation50_spill] sm:$0xff] %v2259_v19  ;;  %v2261_v1 = vadd.f32 %v532_v6, %v337_v7  ;;  %v517_v19 = vadd.f32 %v516_v20, %v341_v3 }
 0x141   : > { %v534_v63 = vpop.f32.mrf.mxu1 }
 0x142   : > { %2585 = vst [vmem:[#allocation51_spill] sm:$0xff] %v2261_v1  ;;  %v2263_v62 = vadd.f32 %v534_v63, %v341_v3 }
 0x144   : > { %2586 = vst [vmem:[#allocation52_spill] sm:$0xff] %v2263_v62  ;;  %v694_v10 = vpop.f32.mrf.mxu0  ;;  %v765_v8 = vpop.f32.mrf.mxu1 }
 0x145   : > { %v770_v5 = vadd.f32 %v694_v10, %v426_v61  ;;  %v772_v4 = vadd.f32 %v765_v8, %v515_v15  ;;  %v2589_v61 = vld [vmem:[#allocation18_spill] sm:$0xff]  ;;  %v2591_v8 = vld [vmem:[#allocation20_spill] sm:$0xff] }
 0x146   : > { %v696_v9 = vpop.f32.mrf.mxu0  ;;  %v767_v18 = vpop.f32.mrf.mxu1 }
 0x147   : > { %v774_v2 = vmul.f32 0.5, %v770_v5  ;;  %v771_v60 = vadd.f32 %v696_v9, %v428_v11  ;;  %v773_v6 = vadd.f32 %v767_v18, %v517_v19  ;;  %v797_v11 = vpop.permute.xlu0 %796  ;;  %v2590_v5 = vld [vmem:[#allocation19_spill] sm:$0xff]  ;;  %v2593_v18 = vld [vmem:[#allocation22_spill] sm:$0xff] }
 0x148   : > { %vm798_vm3 = vcmp.eq.s32.totalorder %v797_v11, 1  ;;  %v2601_v11 = vld [vmem:[#allocation30_spill] sm:$0xff] }
 0x149   : > { %1575 = vtanh.f32 %v774_v2  ;;  %v778_v16 = vmul.f32 0.5, %v771_v60  ;;  %v783_v1 = vmul.f32 0.5, %v773_v6  ;;  %v2594_v6 = vld [vmem:[#allocation23_spill] sm:$0xff] }
 0x14b   : > { %1577 = vtanh.f32 %v778_v16  ;;  %v2592_v16 = vld [vmem:[#allocation21_spill] sm:$0xff] }
 0x14c   : > { %1579 = vtanh.f32 %v772_v4 }
 0x14d   : > { %1581 = vtanh.f32 %v783_v1  ;;  %v2588_v1 = vld [vmem:[#allocation17_spill] sm:$0xff] }
 0x156   : > { %v1576_v63 = vpop.eup %1575 }
 0x157   : > { %v776_v62 = vmul.f32 0.5, %v1576_v63  ;;  %v2595_v63 = vld [vmem:[#allocation24_spill] sm:$0xff] }
 0x158   : > { %v1578_v12 = vpop.eup %1577 }
 0x159   : > { %v777_v55 = vadd.f32 0.5, %v776_v62  ;;  %v780_v17 = vmul.f32 0.5, %v1578_v12  ;;  %v1580_v9 = vpop.eup %1579  ;;  %v2596_v12 = vld [vmem:[#allocation25_spill] sm:$0xff] }
 0x15a   : > { %v1582_v20 = vpop.eup %1581 }
 0x15b   : > { %v781_v10 = vadd.f32 0.5, %v780_v17  ;;  %v788_v2 = vmul.f32 %v1580_v9, %v777_v55  ;;  %v785_v3 = vmul.f32 0.5, %v1582_v20  ;;  %v2597_v55 = vld [vmem:[#allocation26_spill] sm:$0xff]  ;;  %v2598_v17 = vld [vmem:[#allocation27_spill] sm:$0xff] }
 0x15c   : > { %v2602_v9 = vld [vmem:[#allocation31_spill] sm:$0xff] }
 0x15d   : > { %v787_v7 = vmul.f32 %v781_v10, %v620_v13  ;;  %v786_v4 = vadd.f32 0.5, %v785_v3  ;;  %v2600_v10 = vld [vmem:[#allocation29_spill] sm:$0xff]  ;;  %v2606_v20 = vld [vmem:[#allocation35_spill] sm:$0xff] }
 0x15e   : > { %v2607_v3 = vld [vmem:[#allocation37_spill] sm:$0xff] }
 0x15f   : > { %v789_v60 = vadd.f32 %v788_v2, %v787_v7  ;;  %v2603_v7 = vld [vmem:[#allocation32_spill] sm:$0xff]  ;;  %v2604_v2 = vld [vmem:[#allocation33_spill] sm:$0xff] }
 0x161   : > { %1583 = vtanh.f32 %v789_v60  ;;  %v2265_v0 = vsel %vm798_vm3, %v789_v60, %v620_v13  ;;  %v2599_v13 = vld [vmem:[#allocation28_spill] sm:$0xff]  ;;  %v2605_v60 = vld [vmem:[#allocation34_spill] sm:$0xff] }
 0x16e   : > { %v1584_v15 = vpop.eup %1583 }
 0x16f   : > { %v791_v19 = vmul.f32 %v1584_v15, %v786_v4  ;;  %v2608_v4 = vld [vmem:[#allocation38_spill] sm:$0xff]  ;;  %v2609_v15 = vld [vmem:[#allocation39_spill] sm:$0xff] }
 0x171   : > { %v2268_v62 = vsel %vm798_vm3, %v791_v19, %v2157_v14  ;;  %v2587_v14 = vld [vmem:[#allocation16_spill] sm:$0xff]  ;;  %v2610_v19 = vmov 0.0  }
 0x172   : > { %873 = vmatmul.mubr.f32.vlgmr.msra.gmra.mxu0 %v2268_v62  ;;  %944 = vmatmul.mubr.f32.vlgmr.msra.gmra.mxu1 %v2268_v62 }
 0x173   : > { %990 = vmatpush1.msra.mxu0 %v1943_v21  ;;  %1061 = vmatpush1.msra.mxu1 %v1945_v22 }
 0x174   : > { %991 = vmatprep.subr.mxu0 %v1949_v23  ;;  %1062 = vmatprep.subr.mxu1 %v1951_v24 }
 0x175   : > { %992 = vmatpush1.msra.mxu0 %v1955_v25  ;;  %1063 = vmatpush1.msra.mxu1 %v1957_v26 }
 0x176   : > { %993 = vmatprep.subr.mxu0 %v1961_v27  ;;  %1064 = vmatprep.subr.mxu1 %v1963_v28 }
 0x177   : > { %994 = vmatpush1.msra.mxu0 %v1967_v29  ;;  %1065 = vmatpush1.msra.mxu1 %v1969_v30 }
 0x178   : > { %995 = vmatprep.subr.mxu0 %v1973_v31  ;;  %1066 = vmatprep.subr.mxu1 %v1975_v32 }
 0x179   : > { %996 = vmatpush1.msra.mxu0 %v1979_v33  ;;  %1067 = vmatpush1.msra.mxu1 %v1981_v34 }
 0x17a   : > { %997 = vmatprep.subr.mxu0 %v1985_v35  ;;  %1068 = vmatprep.subr.mxu1 %v1987_v36 }
 0x17b   : > { %998 = vmatpush1.msra.mxu0 %v1991_v37  ;;  %1069 = vmatpush1.msra.mxu1 %v1993_v38 }
 0x17c   : > { %999 = vmatprep.subr.mxu0 %v1997_v39  ;;  %1070 = vmatprep.subr.mxu1 %v1999_v40 }
 0x17d   : > { %1000 = vmatpush1.msra.mxu0 %v2003_v41  ;;  %1071 = vmatpush1.msra.mxu1 %v2005_v42 }
 0x17e   : > { %1001 = vmatprep.subr.mxu0 %v2009_v43  ;;  %1072 = vmatprep.subr.mxu1 %v2011_v44 }
 0x17f   : > { %1002 = vmatpush1.msra.mxu0 %v2015_v45  ;;  %1073 = vmatpush1.msra.mxu1 %v2017_v46 }
 0x180   : > { %1003 = vmatprep.subr.mxu0 %v2021_v47  ;;  %1074 = vmatprep.subr.mxu1 %v2023_v48 }
 0x181   : > { %1004 = vmatpush1.msra.mxu0 %v2027_v49  ;;  %1075 = vmatpush1.msra.mxu1 %v2029_v50 }
 0x182   : > { %1005 = vmatprep.subr.mxu0 %v2033_v51  ;;  %1076 = vmatprep.subr.mxu1 %v2035_v52 }
 0x183   : > { %1006 = vmatpush1.msra.mxu0 %v2039_v53  ;;  %1077 = vmatpush1.msra.mxu1 %v2043_v54 }
 0x184   : > { %1007 = vmatprep.subr.mxu0 %v2048_v56  ;;  %1078 = vmatprep.subr.mxu1 %v2050_v57 }
 0x185   : > { %1008 = vmatpush1.msra.mxu0 %v2054_v58  ;;  %1079 = vmatpush1.msra.mxu1 %v2058_v59 }
 0x186   : > { %1009 = vmatprep.subr.mxu0 %v2587_v14  ;;  %1080 = vmatprep.subr.mxu1 %v2588_v1 }
 0x187   : > { %1010 = vmatpush1.msra.mxu0 %v2589_v61  ;;  %1081 = vmatpush1.msra.mxu1 %v2590_v5 }
 0x188   : > { %1011 = vmatprep.subr.mxu0 %v2591_v8  ;;  %1082 = vmatprep.subr.mxu1 %v2592_v16 }
 0x189   : > { %1012 = vmatpush1.msra.mxu0 %v2593_v18  ;;  %1083 = vmatpush1.msra.mxu1 %v2594_v6 }
 0x18a   : > { %1013 = vmatprep.subr.mxu0 %v2595_v63  ;;  %1084 = vmatprep.subr.mxu1 %v2596_v12  ;;  %v2618_v12 = vld [vmem:[#allocation43_spill] sm:$0xff] }
 0x18b   : > { %1014 = vmatpush1.msra.mxu0 %v2597_v55  ;;  %1085 = vmatpush1.msra.mxu1 %v2598_v17  ;;  %v2617_v17 = vld [vmem:[#allocation42_spill] sm:$0xff] }
 0x18c   : > { %1015 = vmatprep.subr.mxu0 %v2599_v13  ;;  %1086 = vmatprep.subr.mxu1 %v2600_v10  ;;  %v2611_v10 = vld [vmem:[#allocation40_spill] sm:$0xff] }
 0x18d   : > { %1016 = vmatpush1.msra.mxu0 %v2601_v11  ;;  %1087 = vmatpush1.msra.mxu1 %v2602_v9  ;;  %v2612_v9 = vld [vmem:[#allocation14_spill] sm:$0xff] }
 0x18e   : > { %1017 = vmatprep.subr.mxu0 %v2603_v7  ;;  %1088 = vmatprep.subr.mxu1 %v2604_v2  ;;  %v2613_v7 = vld [vmem:[#allocation15_spill] sm:$0xff]  ;;  %v2614_v2 = vld [vmem:[#allocation36_spill] sm:$0xff] }
 0x18f   : > { %1018 = vmatpush1.msra.mxu0 %v2605_v60  ;;  %1089 = vmatpush1.msra.mxu1 %v2606_v20  ;;  %v1154_v60 = vstv %s1153_s12  ;;  %v1335_v20 = vstv %s1334_s13 }
 0x190   : > { %1019 = vmatprep.subr.mxu0 %v2607_v3  ;;  %1090 = vmatprep.subr.mxu1 %v2608_v4  ;;  %vm1155_vm4 = vcmp.gt.s32.totalorder %v2614_v2, %v1154_v60  ;;  %vm1336_vm5 = vcmp.gt.s32.totalorder %v2614_v2, %v1335_v20  ;;  %v2615_v4 = vmov 0   ;;  %v2619_v20 = vld [vmem:[#allocation45_spill] sm:$0xff] }
 0x191   : > { %1020 = vmatpush1.msra.mxu0 %v2609_v15  ;;  %1053 = vmatprep.mubr.f32.mxu0 %v2610_v19  ;;  %v1156_v15 = vsel %vm1155_vm4, 1, %v2615_v4  ;;  %v1337_v3 = vsel %vm1336_vm5, 1, %v2615_v4 }
 0x192   : > { %1091 = vmatpush1.msra.mxu1 %v2611_v10  ;;  %1124 = vmatprep.mubr.f32.mxu1 %v2610_v19  ;;  %v2616_v19 = vld [vmem:[#allocation41_spill] sm:$0xff] }
 0x193   : > { %1170 = vmatprep.subr.mxu0 %v2612_v9  ;;  %1241 = vmatprep.subr.mxu1 %v2613_v7 }
 0x194   : > { %1158 = vperm.xlu1 %1574, %v1156_v15  }
 0x198   : > { %1339 = vperm.xlu1 %1574, %v1337_v3  }
 0x232   : > { %v874_v10 = vpop.f32.mrf.mxu0  ;;  %v945_v9 = vpop.f32.mrf.mxu1 }
 0x233   : > { %v950_v11 = vadd.f32 %v874_v10, %v2616_v19  ;;  %v952_v63 = vadd.f32 %v945_v9, %v2618_v12 }
 0x234   : > { %v876_v13 = vpop.f32.mrf.mxu0  ;;  %v947_v2 = vpop.f32.mrf.mxu1 }
 0x235   : > { %v954_v7 = vmul.f32 0.5, %v950_v11  ;;  %v951_v55 = vadd.f32 %v876_v13, %v2617_v17  ;;  %v953_v15 = vadd.f32 %v947_v2, %v2619_v20  ;;  %v978_v17 = vpop.permute.xlu0 %977 }
 0x236   : > { %vm979_vm6 = vcmp.eq.s32.totalorder %v978_v17, 1 }
 0x237   : > { %1585 = vtanh.f32 %v954_v7  ;;  %v958_v60 = vmul.f32 0.5, %v951_v55  ;;  %v963_v6 = vmul.f32 0.5, %v953_v15 }
 0x239   : > { %1587 = vtanh.f32 %v958_v60 }
 0x23a   : > { %1589 = vtanh.f32 %v952_v63 }
 0x23b   : > { %1591 = vtanh.f32 %v963_v6 }
 0x244   : > { %v1586_v4 = vpop.eup %1585 }
 0x245   : > { %v956_v3 = vmul.f32 0.5, %v1586_v4 }
 0x246   : > { %v1588_v18 = vpop.eup %1587 }
 0x247   : > { %v957_v16 = vadd.f32 0.5, %v956_v3  ;;  %v960_v10 = vmul.f32 0.5, %v1588_v18  ;;  %v1590_v19 = vpop.eup %1589 }
 0x248   : > { %v1592_v55 = vpop.eup %1591 }
 0x249   : > { %v961_v11 = vadd.f32 0.5, %v960_v10  ;;  %v968_v8 = vmul.f32 %v1590_v19, %v957_v16  ;;  %v965_v9 = vmul.f32 0.5, %v1592_v55 }
 0x24b   : > { %v967_v13 = vmul.f32 %v961_v11, %v2265_v0  ;;  %v966_v7 = vadd.f32 0.5, %v965_v9 }
 0x24d   : > { %v969_v12 = vadd.f32 %v968_v8, %v967_v13  ;;  %v2645_v13 = vld [vmem:[#allocation48_spill] sm:$0xff] }
 0x24f   : > { %1593 = vtanh.f32 %v969_v12  ;;  %v2350_v63 = vsel %vm979_vm6, %v969_v12, %v2265_v0 }
 0x25c   : > { %v1594_v60 = vpop.eup %1593 }
 0x25d   : > { %v971_v2 = vmul.f32 %v1594_v60, %v966_v7  ;;  %v2646_v60 = vld [vmem:[#allocation50_spill] sm:$0xff] }
 0x25f   : > { %v2353_v18 = vsel %vm979_vm6, %v971_v2, %v2268_v62 }
 0x260   : > { %1054 = vmatmul.mubr.f32.vlgmr.msra.gmra.mxu0 %v2353_v18  ;;  %1125 = vmatmul.mubr.f32.vlgmr.msra.gmra.mxu1 %v2353_v18 }
 0x261   : > { %1171 = vmatpush1.msra.mxu0 %v1943_v21  ;;  %1242 = vmatpush1.msra.mxu1 %v1945_v22  ;;  %v2620_v21 = vld [vmem:[#allocation20_spill] sm:$0xff]  ;;  %v2621_v22 = vld [vmem:[#allocation21_spill] sm:$0xff] }
 0x262   : > { %1172 = vmatprep.subr.mxu0 %v1949_v23  ;;  %1243 = vmatprep.subr.mxu1 %v1951_v24  ;;  %v2622_v23 = vld [vmem:[#allocation22_spill] sm:$0xff]  ;;  %v2623_v24 = vld [vmem:[#allocation23_spill] sm:$0xff] }
 0x263   : > { %1173 = vmatpush1.msra.mxu0 %v1955_v25  ;;  %1244 = vmatpush1.msra.mxu1 %v1957_v26  ;;  %v2624_v25 = vld [vmem:[#allocation24_spill] sm:$0xff]  ;;  %v2625_v26 = vld [vmem:[#allocation25_spill] sm:$0xff] }
 0x264   : > { %1174 = vmatprep.subr.mxu0 %v1961_v27  ;;  %1245 = vmatprep.subr.mxu1 %v1963_v28  ;;  %v2626_v27 = vld [vmem:[#allocation26_spill] sm:$0xff]  ;;  %v2627_v28 = vld [vmem:[#allocation27_spill] sm:$0xff] }
 0x265   : > { %1175 = vmatpush1.msra.mxu0 %v1967_v29  ;;  %1246 = vmatpush1.msra.mxu1 %v1969_v30  ;;  %v2628_v29 = vld [vmem:[#allocation28_spill] sm:$0xff]  ;;  %v2629_v30 = vld [vmem:[#allocation29_spill] sm:$0xff] }
 0x266   : > { %1176 = vmatprep.subr.mxu0 %v1973_v31  ;;  %1247 = vmatprep.subr.mxu1 %v1975_v32  ;;  %v2630_v31 = vld [vmem:[#allocation30_spill] sm:$0xff]  ;;  %v2631_v32 = vld [vmem:[#allocation31_spill] sm:$0xff] }
 0x267   : > { %1177 = vmatpush1.msra.mxu0 %v1979_v33  ;;  %1248 = vmatpush1.msra.mxu1 %v1981_v34  ;;  %v2632_v33 = vld [vmem:[#allocation32_spill] sm:$0xff]  ;;  %v2633_v34 = vld [vmem:[#allocation33_spill] sm:$0xff] }
 0x268   : > { %1178 = vmatprep.subr.mxu0 %v1985_v35  ;;  %1249 = vmatprep.subr.mxu1 %v1987_v36  ;;  %v2634_v35 = vld [vmem:[#allocation34_spill] sm:$0xff]  ;;  %v2635_v36 = vld [vmem:[#allocation35_spill] sm:$0xff] }
 0x269   : > { %1179 = vmatpush1.msra.mxu0 %v1991_v37  ;;  %1250 = vmatpush1.msra.mxu1 %v1993_v38  ;;  %v2636_v37 = vld [vmem:[#allocation37_spill] sm:$0xff]  ;;  %v2637_v38 = vld [vmem:[#allocation38_spill] sm:$0xff] }
 0x26a   : > { %1180 = vmatprep.subr.mxu0 %v1997_v39  ;;  %1251 = vmatprep.subr.mxu1 %v1999_v40  ;;  %v2638_v39 = vld [vmem:[#allocation39_spill] sm:$0xff]  ;;  %v2639_v40 = vmov 0.0  }
 0x26b   : > { %1181 = vmatpush1.msra.mxu0 %v2003_v41  ;;  %1252 = vmatpush1.msra.mxu1 %v2005_v42  ;;  %v2640_v41 = vld [vmem:[#allocation40_spill] sm:$0xff] }
 0x26c   : > { %1182 = vmatprep.subr.mxu0 %v2009_v43  ;;  %1253 = vmatprep.subr.mxu1 %v2011_v44  ;;  %v2641_v43 = vld [vmem:[#allocation44_spill] sm:$0xff] }
 0x26d   : > { %1183 = vmatpush1.msra.mxu0 %v2015_v45  ;;  %1254 = vmatpush1.msra.mxu1 %v2017_v46 }
 0x26e   : > { %1184 = vmatprep.subr.mxu0 %v2021_v47  ;;  %1255 = vmatprep.subr.mxu1 %v2023_v48  ;;  %v2642_v48 = vld [vmem:[#allocation46_spill] sm:$0xff] }
 0x26f   : > { %1185 = vmatpush1.msra.mxu0 %v2027_v49  ;;  %1256 = vmatpush1.msra.mxu1 %v2029_v50  ;;  %v2643_v50 = vld [vmem:[#allocation47_spill] sm:$0xff] }
 0x270   : > { %1186 = vmatprep.subr.mxu0 %v2033_v51  ;;  %1257 = vmatprep.subr.mxu1 %v2035_v52 }
 0x271   : > { %1187 = vmatpush1.msra.mxu0 %v2039_v53  ;;  %1258 = vmatpush1.msra.mxu1 %v2043_v54  ;;  %v2644_v54 = vld [vmem:[#allocation49_spill] sm:$0xff] }
 0x272   : > { %1188 = vmatprep.subr.mxu0 %v2048_v56  ;;  %1259 = vmatprep.subr.mxu1 %v2050_v57 }
 0x273   : > { %1189 = vmatpush1.msra.mxu0 %v2054_v58  ;;  %1260 = vmatpush1.msra.mxu1 %v2058_v59 }
 0x274   : > { %1190 = vmatprep.subr.mxu0 %v2587_v14  ;;  %1261 = vmatprep.subr.mxu1 %v2588_v1 }
 0x275   : > { %1191 = vmatpush1.msra.mxu0 %v2589_v61  ;;  %1262 = vmatpush1.msra.mxu1 %v2590_v5  ;;  %v1159_v5 = vpop.permute.xlu1 %1158 }
 0x276   : > { %1192 = vmatprep.subr.mxu0 %v2620_v21  ;;  %1263 = vmatprep.subr.mxu1 %v2621_v22  ;;  %vm1160_vm7 = vcmp.eq.s32.totalorder %v1159_v5, 1  ;;  %v2647_v21 = vld [vmem:[#allocation51_spill] sm:$0xff] }
 0x277   : > { %1193 = vmatpush1.msra.mxu0 %v2622_v23  ;;  %1264 = vmatpush1.msra.mxu1 %v2623_v24  ;;  %v2648_v24 = vld [vmem:[#allocation52_spill] sm:$0xff] }
 0x278   : > { %1194 = vmatprep.subr.mxu0 %v2624_v25  ;;  %1265 = vmatprep.subr.mxu1 %v2625_v26 }
 0x279   : > { %1195 = vmatpush1.msra.mxu0 %v2626_v27  ;;  %1266 = vmatpush1.msra.mxu1 %v2627_v28 }
 0x27a   : > { %1196 = vmatprep.subr.mxu0 %v2628_v29  ;;  %1267 = vmatprep.subr.mxu1 %v2629_v30 }
 0x27b   : > { %1197 = vmatpush1.msra.mxu0 %v2630_v31  ;;  %1268 = vmatpush1.msra.mxu1 %v2631_v32 }
 0x27c   : > { %1198 = vmatprep.subr.mxu0 %v2632_v33  ;;  %1269 = vmatprep.subr.mxu1 %v2633_v34  ;;  %v1340_v34 = vpop.permute.xlu1 %1339 }
 0x27d   : > { %1199 = vmatpush1.msra.mxu0 %v2634_v35  ;;  %1270 = vmatpush1.msra.mxu1 %v2635_v36  ;;  %vm1341_vm8 = vcmp.eq.s32.totalorder %v1340_v34, 1 }
 0x27e   : > { %1200 = vmatprep.subr.mxu0 %v2636_v37  ;;  %1271 = vmatprep.subr.mxu1 %v2637_v38 }
 0x27f   : > { %1201 = vmatpush1.msra.mxu0 %v2638_v39  ;;  %1234 = vmatprep.mubr.f32.mxu0 %v2639_v40 }
 0x280   : > { %1272 = vmatpush1.msra.mxu1 %v2640_v41  ;;  %1305 = vmatprep.mubr.f32.mxu1 %v2639_v40 }
 0x320   : > { %v1055_v42 = vpop.f32.mrf.mxu0  ;;  %v1126_v45 = vpop.f32.mrf.mxu1 }
 0x321   : > { %v1131_v44 = vadd.f32 %v1055_v42, %v2641_v43  ;;  %v1133_v51 = vadd.f32 %v1126_v45, %v2643_v50 }
 0x322   : > { %v1057_v46 = vpop.f32.mrf.mxu0  ;;  %v1128_v53 = vpop.f32.mrf.mxu1 }
 0x323   : > { %v1135_v47 = vmul.f32 0.5, %v1131_v44  ;;  %v1132_v49 = vadd.f32 %v1057_v46, %v2642_v48  ;;  %v1134_v56 = vadd.f32 %v1128_v53, %v2644_v54 }
 0x325   : > { %1595 = vtanh.f32 %v1135_v47  ;;  %v1139_v52 = vmul.f32 0.5, %v1132_v49  ;;  %v1144_v57 = vmul.f32 0.5, %v1134_v56 }
 0x327   : > { %1597 = vtanh.f32 %v1139_v52 }
 0x328   : > { %1599 = vtanh.f32 %v1133_v51 }
 0x329   : > { %1601 = vtanh.f32 %v1144_v57 }
 0x332   : > { %v1596_v58 = vpop.eup %1595 }
 0x333   : > { %v1137_v59 = vmul.f32 0.5, %v1596_v58 }
 0x334   : > { %v1598_v0 = vpop.eup %1597 }
 0x335   : > { %v1138_v62 = vadd.f32 0.5, %v1137_v59  ;;  %v1141_v14 = vmul.f32 0.5, %v1598_v0  ;;  %v1600_v1 = vpop.eup %1599 }
 0x336   : > { %v1602_v15 = vpop.eup %1601 }
 0x337   : > { %v1142_v61 = vadd.f32 0.5, %v1141_v14  ;;  %v1149_v8 = vmul.f32 %v1600_v1, %v1138_v62  ;;  %v1146_v4 = vmul.f32 0.5, %v1602_v15 }
 0x339   : > { %v1148_v16 = vmul.f32 %v1142_v61, %v2350_v63  ;;  %v1147_v3 = vadd.f32 0.5, %v1146_v4 }
 0x33b   : > { %v1150_v6 = vadd.f32 %v1149_v8, %v1148_v16 }
 0x33d   : > { %1603 = vtanh.f32 %v1150_v6  ;;  %v1162_v20 = vsel %vm1160_vm7, %v1150_v6, %v2350_v63 }
 0x34a   : > { %v1604_v10 = vpop.eup %1603 }
 0x34b   : > { %v1152_v19 = vmul.f32 %v1604_v10, %v1147_v3 }
 0x34d   : > { %v1161_v11 = vsel %vm1160_vm7, %v1152_v19, %v2353_v18 }
 0x34e   : > { %1235 = vmatmul.mubr.f32.vlgmr.msra.gmra.mxu0 %v1161_v11  ;;  %1306 = vmatmul.mubr.f32.vlgmr.msra.gmra.mxu1 %v1161_v11 }
 0x40e   : > { %v1236_v17 = vpop.f32.mrf.mxu0  ;;  %v1307_v55 = vpop.f32.mrf.mxu1 }
 0x40f   : > { %v1312_v12 = vadd.f32 %v1236_v17, %v2645_v13  ;;  %v1314_v63 = vadd.f32 %v1307_v55, %v2647_v21 }
 0x410   : > { %v1238_v9 = vpop.f32.mrf.mxu0  ;;  %v1309_v23 = vpop.f32.mrf.mxu1 }
 0x411   : > { %v1316_v7 = vmul.f32 0.5, %v1312_v12  ;;  %v1313_v2 = vadd.f32 %v1238_v9, %v2646_v60  ;;  %v1315_v25 = vadd.f32 %v1309_v23, %v2648_v24 }
 0x413   : > { %1605 = vtanh.f32 %v1316_v7  ;;  %v1320_v22 = vmul.f32 0.5, %v1313_v2  ;;  %v1325_v18 = vmul.f32 0.5, %v1315_v25 }
 0x415   : > { %1607 = vtanh.f32 %v1320_v22 }
 0x416   : > { %1609 = vtanh.f32 %v1314_v63 }
 0x417   : > { %1611 = vtanh.f32 %v1325_v18 }
 0x420   : > { %v1606_v26 = vpop.eup %1605 }
 0x421   : > { %v1318_v27 = vmul.f32 0.5, %v1606_v26 }
 0x422   : > { %v1608_v28 = vpop.eup %1607 }
 0x423   : > { %v1319_v29 = vadd.f32 0.5, %v1318_v27  ;;  %v1322_v30 = vmul.f32 0.5, %v1608_v28  ;;  %v1610_v31 = vpop.eup %1609 }
 0x424   : > { %v1612_v38 = vpop.eup %1611 }
 0x425   : > { %v1323_v32 = vadd.f32 0.5, %v1322_v30  ;;  %v1330_v33 = vmul.f32 %v1610_v31, %v1319_v29  ;;  %v1327_v39 = vmul.f32 0.5, %v1612_v38 }
 0x427   : > { %v1329_v35 = vmul.f32 %v1323_v32, %v1162_v20  ;;  %v1328_v40 = vadd.f32 0.5, %v1327_v39 }
 0x429   : > { %v1331_v36 = vadd.f32 %v1330_v33, %v1329_v35 }
 0x42b   : > { %1613 = vtanh.f32 %v1331_v36  ;;  %v1343_v37 = vsel %vm1341_vm8, %v1331_v36, %v1162_v20 }
 0x42c   : > { %1345 = vst [vmem:[#allocation2] sm:$0xff] %v1343_v37 }
 0x438   : > { %v1614_v41 = vpop.eup %1613 }
 0x439   : > { %v1333_v42 = vmul.f32 %v1614_v41, %v1328_v40 }
 0x43b   : > { %v1342_v43 = vsel %vm1341_vm8, %v1333_v42, %v1161_v11 }
 0x43c   : > { %1344 = vst [vmem:[#allocation10] sm:$0xff] %v1342_v43 }
 0x43d   : > { %1708 = shalt.err (!%p1705_p12)
}
 0x43e   : > { %1494 = dma.vmem_to_hbm [thread:$0]  (%p2434_p4), %s1356_s15, 128, %s2472_s5, [#allocation6]  }
 0x43f   : > { %1752 = dma.done.wait (%p2434_p4), [#allocation6], 128  }
 0x440   : > { %1754 = vsyncadd (%p2434_p4), [#allocation6], 4294967168 }
 0x441 PF: > { %s20_s23 = sadd.s32 1, %s1777_s23   ;;  %s2650_s18 = smov %s1761_s19 }
 0x442   : > { %p17_p11 = scmp.ge.s32.totalorder %s20_s23, 4   ;;  %s2651_s19 = smov %s1765_s20 }
 0x443   : > { %s2652_s20 = smov %s1907_s6  ;;  %s2653_s21 = smov %s1773_s22 }
 0x444   : > { %s2654_s22 = smov %s2656_s16  ;;  %19 = sbr.rel (!%p17_p11) target bundleno = 6 (0x6), region = 97 }
 0x449   :  { %1368 = vsyncpa [#allocation5], 1 }
 0x44a   :  { %1370 = vsyncpa [#allocation5 + $0x1], 1 }
 0x44b   :  { %1371 = vsyncpa [#allocation8], 1 }
 0x44c   :  { %1372 = vsyncpa [#allocation6], 1 }
 0x44d   :  { %1374 = vsyncpa [#allocation6 + $0x1], 1 }

</bundles_post_ra>
